<compile_context>
chip_gen: v7x
topology: tpu7x:2x2x1
jax: 0.10.0
libtpu: 0.0.40
codegen_flags: <defaults>
</compile_context>

<pallas_src>
import functools

import jax
import jax.numpy as jnp
from jax import lax
from jax.experimental import pallas as pl
from jax.experimental.pallas import tpu as pltpu

TOKEN_SELF_ATTN_VALUE = -5e4  # same constant as reformer_pytorch


# ---------------------------------------------------------------------------
# small helpers
# ---------------------------------------------------------------------------

def _row_tiles(n, tm_desired=512):
    """Pick a row tile (multiple of 8) and padded row count for a 1-D row grid."""
    n8 = ((n + 7) // 8) * 8
    tm = min(tm_desired, n8)
    tm = ((tm + 7) // 8) * 8
    n_pad = ((n8 + tm - 1) // tm) * tm
    return n_pad, tm


def _pad_rows(x, n_pad):
    n = x.shape[0]
    if n_pad == n:
        return x
    return jnp.pad(x, ((0, n_pad - n), (0, 0)))


def _pick_chunk_tile(n_chunks, max_ct=32):
    """Chunk-tile size: a multiple of 8 (sublane rule) or the full chunk count."""
    if n_chunks <= max_ct:
        return n_chunks
    start = max_ct - (max_ct % 8)
    for cand in range(start, 0, -8):
        if n_chunks % cand == 0:
            return cand
    return n_chunks


def _pick_seq_tile(t, max_tt=512):
    """Sequence tile for the round-combine kernel (multiple of 8 dividing T, or T)."""
    if t <= max_tt:
        return t
    start = max_tt - (max_tt % 8)
    for cand in range(start, 7, -8):
        if t % cand == 0:
            return cand
    return t


# ---------------------------------------------------------------------------
# Pallas kernels
# ---------------------------------------------------------------------------

def _qkv_kernel(x_ref, w_ref, qkv_ref):
    # single matmul against the concatenated [w_qk | w_v] weight; bf16 MXU, f32 accumulate
    x = x_ref[...].astype(jnp.bfloat16)
    qkv_ref[...] = jnp.dot(x, w_ref[...],
                           preferred_element_type=jnp.float32).astype(qkv_ref.dtype)


def _post_attn_kernel(attn_ref, x_ref, wout_ref, bout_ref, g1_ref, beta1_ref,
                      w1_ref, b1_ref, w2_ref, b2_ref, g2_ref, beta2_ref, o_ref,
                      *, eps1, eps2):
    # to_out(attn) + residual -> LayerNorm(eps1) -> relu(linear1) -> linear2 -> +residual
    # -> LayerNorm(eps2); post-attn / FFN dropouts are identity in eval mode.
    x = x_ref[...].astype(jnp.float32)
    y = jnp.dot(attn_ref[...], wout_ref[...], preferred_element_type=jnp.float32)
    y = y + bout_ref[...] + x
    mu = jnp.mean(y, axis=-1, keepdims=True)
    var = jnp.mean((y - mu) ** 2, axis=-1, keepdims=True)
    y = ((y - mu) * lax.rsqrt(var + eps1)) * g1_ref[...] + beta1_ref[...]

    h = jnp.dot(y.astype(jnp.bfloat16), w1_ref[...],
                preferred_element_type=jnp.float32) + b1_ref[...]
    h = jnp.maximum(h, 0.0)
    z = jnp.dot(h.astype(jnp.bfloat16), w2_ref[...],
                preferred_element_type=jnp.float32) + b2_ref[...] + y
    mu2 = jnp.mean(z, axis=-1, keepdims=True)
    var2 = jnp.mean((z - mu2) ** 2, axis=-1, keepdims=True)
    o_ref[...] = (((z - mu2) * lax.rsqrt(var2 + eps2)) * g2_ref[...]
                  + beta2_ref[...]).astype(o_ref.dtype)


def _lsh_attn_kernel(sqk_ref, bqk_ref, sv_ref, bv_ref, st_ref, pt_ref, o_ref, lse_ref,
                     *, causal, scale, ct):
    # One (batch*head, chunk_tile) block per grid step.
    #   sqk/sv : (1, ct, L, dh) sorted chunks (bf16)
    #   bqk/bv : (1, 1, L, dh)  boundary chunk = chunk just before this tile (wrap-around),
    #            fetched via a shifted index_map instead of a rolled HBM copy.
    #   st/pt  : (1, ct, L) int32 sorted positions / look_one_back positions.
    cur_qk = sqk_ref[0]                               # (ct, L, dh) bf16
    cur_v = sv_ref[0]
    cur_t = st_ref[0]                                 # (ct, L) int32
    prev_t = pt_ref[0]                                # (ct, L) int32

    bnd_qk = bqk_ref[0]                               # (1, L, dh) bf16
    bnd_v = bv_ref[0]
    if ct > 1:
        prev_qk = jnp.concatenate([bnd_qk, cur_qk[:ct - 1]], axis=0)
        prev_v = jnp.concatenate([bnd_v, cur_v[:ct - 1]], axis=0)
    else:
        prev_qk, prev_v = bnd_qk, bnd_v

    def normed_key(qk_bf):                            # F.normalize(x, dim=-1) -> bf16 key
        x = qk_bf.astype(jnp.float32)
        ss = jnp.sum(x * x, axis=-1, keepdims=True)
        return (x * lax.rsqrt(jnp.maximum(ss, 1e-24))).astype(jnp.bfloat16)

    neg = -jnp.finfo(jnp.float32).max
    dims_qk = (((2,), (2,)), ((0,), (0,)))
    dims_pv = (((2,), (1,)), ((0,), (0,)))

    # ---- step 1: own (sorted) chunk keys
    d_self = lax.dot_general(cur_qk, normed_key(cur_qk), dims_qk,
                             preferred_element_type=jnp.float32) * scale
    if causal:
        d_self = jnp.where(cur_t[:, :, None] < cur_t[:, None, :], neg, d_self)
    d_self = jnp.where(cur_t[:, :, None] == cur_t[:, None, :], TOKEN_SELF_ATTN_VALUE, d_self)

    m = jnp.max(d_self, axis=-1)                      # (ct, L)
    e = jnp.exp(d_self - m[:, :, None])
    s = jnp.sum(e, axis=-1)
    acc = lax.dot_general(e.astype(jnp.bfloat16), cur_v, dims_pv,
                          preferred_element_type=jnp.float32)

    # ---- step 2: look_one_back neighbour chunk, online rescale (single score tile live)
    d_prev = lax.dot_general(cur_qk, normed_key(prev_qk), dims_qk,
                             preferred_element_type=jnp.float32) * scale
    if causal:
        d_prev = jnp.where(cur_t[:, :, None] < prev_t[:, None, :], neg, d_prev)
    d_prev = jnp.where(cur_t[:, :, None] == prev_t[:, None, :], TOKEN_SELF_ATTN_VALUE, d_prev)

    m_new = jnp.maximum(m, jnp.max(d_prev, axis=-1))
    alpha = jnp.exp(m - m_new)
    e2 = jnp.exp(d_prev - m_new[:, :, None])
    s = alpha * s + jnp.sum(e2, axis=-1)
    acc = alpha[:, :, None] * acc + lax.dot_general(e2.astype(jnp.bfloat16), prev_v, dims_pv,
                                                    preferred_element_type=jnp.float32)

    acc = acc * pl.reciprocal(s, approx=True)[:, :, None]
    o_ref[0] = acc.astype(o_ref.dtype)
    lse_ref[0] = (m_new + jnp.log(s)).astype(lse_ref.dtype)


def _combine_rounds_kernel(o_ref, lse_ref, out_ref):
    # o: (R, tt, dh) bf16, lse: (R, tt) f32 -> softmax over the R hash rounds, weighted sum.
    o = o_ref[0].astype(jnp.float32)
    lse = lse_ref[0]
    m = jnp.max(lse, axis=0, keepdims=True)
    e = jnp.exp(lse - m)
    probs = e / jnp.sum(e, axis=0, keepdims=True)     # exact division (tiny; parity)
    out_ref[0] = jnp.sum(o * probs[:, :, None], axis=0).astype(out_ref.dtype)


# ---------------------------------------------------------------------------
# Pallas wrappers (row-tiled, padded grids)
# ---------------------------------------------------------------------------

def pallas_qkv_proj(x, w_qkv, tm=512):
    n, d = x.shape
    d2 = w_qkv.shape[1]
    n_pad, tm = _row_tiles(n, tm)
    xp = _pad_rows(x, n_pad)
    qkv = pl.pallas_call(
        _qkv_kernel,
        out_shape=jax.ShapeDtypeStruct((n_pad, d2), jnp.bfloat16),
        grid=(n_pad // tm,),
        in_specs=[pl.BlockSpec((tm, d), lambda i: (i, 0)),
                  pl.BlockSpec((d, d2), lambda i: (0, 0))],
        out_specs=pl.BlockSpec((tm, d2), lambda i: (i, 0)),
        compiler_params=pltpu.CompilerParams(dimension_semantics=("parallel",)),
    )(xp, w_qkv)
    qkv = qkv[:n]
    return qkv[:, :d], qkv[:, d:]


def pallas_post_attn(attn, x, p, eps1=1e-5, eps2=1e-6, tm=512):
    n, d = x.shape
    dff = p["w1"].shape[1]
    n_pad, tm = _row_tiles(n, tm)
    attn_p = _pad_rows(attn, n_pad)
    x_p = _pad_rows(x, n_pad)
    row = pl.BlockSpec((tm, d), lambda i: (i, 0))
    const_d = pl.BlockSpec((1, d), lambda i: (0, 0))
    const_ff = pl.BlockSpec((1, dff), lambda i: (0, 0))
    out = pl.pallas_call(
        functools.partial(_post_attn_kernel, eps1=eps1, eps2=eps2),
        out_shape=jax.ShapeDtypeStruct((n_pad, d), jnp.float32),
        grid=(n_pad // tm,),
        in_specs=[row, row,
                  pl.BlockSpec((d, d), lambda i: (0, 0)), const_d, const_d, const_d,
                  pl.BlockSpec((d, dff), lambda i: (0, 0)), const_ff,
                  pl.BlockSpec((dff, d), lambda i: (0, 0)), const_d, const_d, const_d],
        out_specs=row,
        compiler_params=pltpu.CompilerParams(dimension_semantics=("parallel",)),
    )(attn_p, x_p,
      p["w_out"], p["b_out"].reshape(1, d), p["ln1_g"].reshape(1, d), p["ln1_b"].reshape(1, d),
      p["w1"], p["b1"].reshape(1, dff),
      p["w2"], p["b2"].reshape(1, d), p["ln2_g"].reshape(1, d), p["ln2_b"].reshape(1, d))
    return out[:n]


# ---------------------------------------------------------------------------
# LSH self-attention (glue: hashing / sorting / gathers; hot path: Pallas)
# ---------------------------------------------------------------------------

def lsh_self_attention(x, params, *, n_heads, bucket_size, n_hashes, causal, rot_key):
    B, T, D = x.shape
    dh = D // n_heads
    BH = B * n_heads

    x_flat = x.reshape(B * T, D)
    qk_flat, v_flat = pallas_qkv_proj(x_flat, params["w_qkv"])   # bf16, (B*T, D) each

    def merge_heads(t):
        return t.reshape(B, T, n_heads, dh).transpose(0, 2, 1, 3).reshape(BH, T, dh)

    qk_h = merge_heads(qk_flat)
    v_h = merge_heads(v_flat)

    n_buckets = T // bucket_size
    assert n_buckets % 2 == 0

    # TODO(synk): the PyTorch module draws fresh torch.randn LSH rotations every forward;
    #             a fixed PRNG key is used here as a deterministic stand-in.
    rotations = jax.random.normal(rot_key, (1, dh, n_hashes, n_buckets // 2), jnp.float32)
    rotations = jnp.broadcast_to(rotations, (BH, dh, n_hashes, n_buckets // 2))
    rotated = jnp.einsum("btf,bfhi->bhti", qk_h.astype(jnp.float32), rotations)
    rotated = jnp.concatenate([rotated, -rotated], axis=-1)
    buckets = jnp.argmax(rotated, axis=-1)                                   # (BH, n_hashes, T)
    offsets = (jnp.arange(n_hashes, dtype=buckets.dtype) * n_buckets).reshape(1, n_hashes, 1)
    buckets = (buckets + offsets).reshape(BH, n_hashes * T)

    ticker = jnp.broadcast_to(jnp.arange(n_hashes * T)[None, :], (BH, n_hashes * T))
    buckets_and_t = T * buckets + (ticker % T)

    # TODO(synk): bucket argsort / undo-sort and the row gathers are data-dependent
    #             permutations left in plain JAX glue (no static BlockSpec equivalent).
    sticker = jnp.argsort(buckets_and_t, axis=-1)
    undo_sort = jnp.argsort(sticker, axis=-1)
    st = (sticker % T).astype(jnp.int32)

    sqk = jnp.take_along_axis(qk_h, st[..., None], axis=1)                   # bf16
    sv = jnp.take_along_axis(v_h, st[..., None], axis=1)                     # bf16

    n_chunks = n_hashes * n_buckets
    L = bucket_size
    sqk_c = sqk.reshape(BH, n_chunks, L, dh)
    sv_c = sv.reshape(BH, n_chunks, L, dh)
    st_c = st.reshape(BH, n_chunks, L)
    # look_one_back positions only (tiny int32 array); the big QK/V neighbours are fetched
    # inside the kernel via a shifted index_map + in-kernel concat (no HBM roll copies).
    pt_c = jnp.roll(st_c, 1, axis=1)

    ct = _pick_chunk_tile(n_chunks)
    n_tiles = n_chunks // ct

    tile4 = pl.BlockSpec((1, ct, L, dh), lambda b, j: (b, j, 0, 0))
    tile3 = pl.BlockSpec((1, ct, L), lambda b, j: (b, j, 0))
    bnd4 = pl.BlockSpec((1, 1, L, dh),
                        lambda b, j: (b, (j * ct - 1) % n_chunks, 0, 0))

    bo, lse = pl.pallas_call(
        functools.partial(_lsh_attn_kernel, causal=causal, scale=dh ** -0.5, ct=ct),
        out_shape=(jax.ShapeDtypeStruct((BH, n_chunks, L, dh), jnp.bfloat16),
                   jax.ShapeDtypeStruct((BH, n_chunks, L), jnp.float32)),
        grid=(BH, n_tiles),
        in_specs=[tile4, bnd4, tile4, bnd4, tile3, tile3],
        out_specs=(tile4, tile3),
        compiler_params=pltpu.CompilerParams(dimension_semantics=("parallel", "parallel")),
    )(sqk_c, sqk_c, sv_c, sv_c, st_c, pt_c)

    # unsort (plain JAX gathers on bf16 / f32), then combine hash rounds in Pallas
    so = bo.reshape(BH, n_hashes * T, dh)
    slog = lse.reshape(BH, n_hashes * T)
    o = jnp.take_along_axis(so, undo_sort[..., None], axis=1).reshape(BH, n_hashes, T, dh)
    logits = jnp.take_along_axis(slog, undo_sort, axis=1).reshape(BH, n_hashes, T)

    tt = _pick_seq_tile(T)
    out_h = pl.pallas_call(
        _combine_rounds_kernel,
        out_shape=jax.ShapeDtypeStruct((BH, T, dh), jnp.bfloat16),
        grid=(BH, T // tt),
        in_specs=[pl.BlockSpec((1, n_hashes, tt, dh), lambda b, t: (b, 0, t, 0)),
                  pl.BlockSpec((1, n_hashes, tt), lambda b, t: (b, 0, t))],
        out_specs=pl.BlockSpec((1, tt, dh), lambda b, t: (b, t, 0)),
        compiler_params=pltpu.CompilerParams(dimension_semantics=("parallel", "parallel")),
    )(o, logits)

    # TODO(synk): folding this head-merge transpose into the combine kernel needs an
    #             in-kernel (H, T, dh)->(T, H*dh) relayout; left to XLA glue for safety.
    attn = out_h.reshape(B, n_heads, T, dh).transpose(0, 2, 1, 3).reshape(B * T, D)
    return attn   # bf16 (B*T, D)


# ---------------------------------------------------------------------------
# Reformer layer / encoder
# ---------------------------------------------------------------------------

def reformer_layer(x, p, *, n_heads, bucket_size, n_hashes, causal):
    B, T, D = x.shape
    attn = lsh_self_attention(x, p, n_heads=n_heads, bucket_size=bucket_size,
                              n_hashes=n_hashes, causal=causal, rot_key=p["rot_key"])
    # fused: to_out projection + residual + LayerNorm(1e-5) + FFN + residual + LayerNorm(1e-6)
    out = pallas_post_attn(attn, x.reshape(B * T, D), p, eps1=1e-5, eps2=1e-6)
    return out.reshape(B, T, D)


def reformer_encoder(x, layer_params, *, n_heads, bucket_size, n_hashes, causal):
    enc_output = x
    for p in layer_params:
        enc_output = reformer_layer(enc_output, p, n_heads=n_heads, bucket_size=bucket_size,
                                    n_hashes=n_hashes, causal=causal)
    return enc_output


def init_layer_params(key, d_model, d_ffn):
    ks = jax.random.split(key, 6)
    s = 0.02
    bf = jnp.bfloat16
    w_qk = jax.random.normal(ks[0], (d_model, d_model), jnp.float32) * s
    w_v = jax.random.normal(ks[1], (d_model, d_model), jnp.float32) * s
    return {
        # matmul weights pre-cast to bf16 once (MXU operands); accumulation stays f32
        "w_qkv": jnp.concatenate([w_qk, w_v], axis=1).astype(bf),      # [w_qk | w_v]
        "w_out": (jax.random.normal(ks[2], (d_model, d_model), jnp.float32) * s).astype(bf),
        "b_out": jnp.zeros((d_model,), jnp.float32),
        "ln1_g": jnp.ones((d_model,), jnp.float32),
        "ln1_b": jnp.zeros((d_model,), jnp.float32),
        "w1": (jax.random.normal(ks[3], (d_model, d_ffn), jnp.float32) * s).astype(bf),
        "b1": jnp.zeros((d_ffn,), jnp.float32),
        "w2": (jax.random.normal(ks[4], (d_ffn, d_model), jnp.float32) * s).astype(bf),
        "b2": jnp.zeros((d_model,), jnp.float32),
        "ln2_g": jnp.ones((d_model,), jnp.float32),
        "ln2_b": jnp.zeros((d_model,), jnp.float32),
        "rot_key": ks[5],  # deterministic stand-in for torch.randn LSH rotations
    }


if __name__ == "__main__":
    # module config: n_steps=8, n_layers=2, d_model=32, n_heads=4,
    #                bucket_size=4, n_hashes=2, causal=False, d_ffn=64, dropout=0.1 (eval)
    B, T, D = 2, 8, 32
    n_layers, n_heads, bucket_size, n_hashes, d_ffn = 2, 4, 4, 2, 64
    causal = False
    assert T % (bucket_size * 2) == 0

    key = jax.random.PRNGKey(0)
    kx, kp = jax.random.split(key)
    x = jax.random.normal(kx, (B, T, D), jnp.float32)
    layer_params = [init_layer_params(k, D, d_ffn) for k in jax.random.split(kp, n_layers)]

    run = jax.jit(functools.partial(reformer_encoder, n_heads=n_heads, bucket_size=bucket_size,
                                    n_hashes=n_hashes, causal=causal))
    out = jax.block_until_ready(run(x, layer_params))

    assert out.shape == (B, T, D)
    assert bool(jnp.all(jnp.isfinite(out)))
    print("KERNEL_OK")
</pallas_src>

<mosaic_0001>
module attributes {stable_mosaic.version = 11 : i64} {
  func.func @_qkv_kernel(%arg0: i32, %arg1: memref<16x32xf32, #tpu.memory_space<vmem>>, %arg2: memref<32x64xbf16, #tpu.memory_space<vmem>>, %arg3: memref<16x64xbf16, #tpu.memory_space<vmem>>) attributes {dimension_semantics = [#tpu.dimension_semantics<parallel>], iteration_bounds = array<i64: 1>, scalar_prefetch = 0 : i64, scratch_operands = 0 : i64, tpu.core_type = #tpu.core_type<tc>, window_params = [{transform_indices = @transform_0, window_bounds = array<i64: 16, 32>}, {pipeline_mode = #tpu.pipeline_mode<synchronous>, transform_indices = @transform_1, window_bounds = array<i64: 32, 64>}, {transform_indices = @transform_2, window_bounds = array<i64: 16, 64>}]} {
    %c0 = arith.constant 0 : index
    %c0_0 = arith.constant 0 : index
    %0 = vector.load %arg1[%c0, %c0_0] : memref<16x32xf32, #tpu.memory_space<vmem>>, vector<16x32xf32>
    %1 = arith.truncf %0 : vector<16x32xf32> to vector<16x32xbf16>
    %c0_1 = arith.constant 0 : index
    %c0_2 = arith.constant 0 : index
    %2 = vector.load %arg2[%c0_1, %c0_2] : memref<32x64xbf16, #tpu.memory_space<vmem>>, vector<32x64xbf16>
    %cst = arith.constant dense<0.000000e+00> : vector<16x64xf32>
    %3 = tpu.matmul %1, %2, %cst {dimension_numbers = #tpu.dot_dimension_numbers<[1], [0], [0], [1], [0, 0, 1, 1], [], []>} : vector<16x32xbf16>, vector<32x64xbf16>, vector<16x64xf32> -> vector<16x64xf32>
    %4 = arith.truncf %3 : vector<16x64xf32> to vector<16x64xbf16>
    %c0_3 = arith.constant 0 : index
    %c0_4 = arith.constant 0 : index
    %5 = vector.load %arg3[%c0_3, %c0_4] : memref<16x64xbf16, #tpu.memory_space<vmem>>, vector<16x64xbf16>
    tpu.vector_store %arg3[%c0_3, %c0_4], %4 {strides = array<i32>} : memref<16x64xbf16, #tpu.memory_space<vmem>>, vector<16x64xbf16>,
    return
  }
  func.func @transform_0(%arg0: i32) -> (i32, i32) {
    %c0_i32 = arith.constant 0 : i32
    %c0_i32_0 = arith.constant 0 : i32
    return %arg0, %c0_i32 : i32, i32
  }
  func.func @transform_1(%arg0: i32) -> (i32, i32) {
    %c0_i32 = arith.constant 0 : i32
    %c0_i32_0 = arith.constant 0 : i32
    %c0_i32_1 = arith.constant 0 : i32
    return %c0_i32, %c0_i32_0 : i32, i32
  }
  func.func @transform_2(%arg0: i32) -> (i32, i32) {
    %c0_i32 = arith.constant 0 : i32
    %c0_i32_0 = arith.constant 0 : i32
    return %arg0, %c0_i32 : i32, i32
  }
}

module attributes {stable_mosaic.version = 11 : i64} {
  func.func @_lsh_attn_kernel(%arg0: i32, %arg1: i32, %arg2: memref<1x4x4x8xbf16, #tpu.memory_space<vmem>>, %arg3: memref<1x1x4x8xbf16, #tpu.memory_space<vmem>>, %arg4: memref<1x4x4x8xbf16, #tpu.memory_space<vmem>>, %arg5: memref<1x1x4x8xbf16, #tpu.memory_space<vmem>>, %arg6: memref<1x4x4xi32, #tpu.memory_space<vmem>>, %arg7: memref<1x4x4xi32, #tpu.memory_space<vmem>>, %arg8: memref<1x4x4x8xbf16, #tpu.memory_space<vmem>>, %arg9: memref<1x4x4xf32, #tpu.memory_space<vmem>>) attributes {dimension_semantics = [#tpu.dimension_semantics<parallel>, #tpu.dimension_semantics<parallel>], iteration_bounds = array<i64: 8, 1>, scalar_prefetch = 0 : i64, scratch_operands = 0 : i64, tpu.core_type = #tpu.core_type<tc>, window_params = [{transform_indices = @transform_0, window_bounds = array<i64: 1, 4, 4, 8>}, {transform_indices = @transform_1, window_bounds = array<i64: 1, 1, 4, 8>}, {transform_indices = @transform_2, window_bounds = array<i64: 1, 4, 4, 8>}, {transform_indices = @transform_3, window_bounds = array<i64: 1, 1, 4, 8>}, {transform_indices = @transform_4, window_bounds = array<i64: 1, 4, 4>}, {transform_indices = @transform_5, window_bounds = array<i64: 1, 4, 4>}, {transform_indices = @transform_6, window_bounds = array<i64: 1, 4, 4, 8>}, {transform_indices = @transform_7, window_bounds = array<i64: 1, 4, 4>}]} {
    %c0 = arith.constant 0 : index
    %c0_0 = arith.constant 0 : index
    %c0_1 = arith.constant 0 : index
    %c0_2 = arith.constant 0 : index
    %0 = vector.load %arg2[%c0, %c0_0, %c0_1, %c0_2] : memref<1x4x4x8xbf16, #tpu.memory_space<vmem>>, vector<1x4x4x8xbf16>
    %1 = vector.shape_cast %0 : vector<1x4x4x8xbf16> to vector<4x4x8xbf16>
    %c0_3 = arith.constant 0 : index
    %c0_4 = arith.constant 0 : index
    %c0_5 = arith.constant 0 : index
    %c0_6 = arith.constant 0 : index
    %2 = vector.load %arg4[%c0_3, %c0_4, %c0_5, %c0_6] : memref<1x4x4x8xbf16, #tpu.memory_space<vmem>>, vector<1x4x4x8xbf16>
    %3 = vector.shape_cast %2 : vector<1x4x4x8xbf16> to vector<4x4x8xbf16>
    %c0_7 = arith.constant 0 : index
    %c0_8 = arith.constant 0 : index
    %c0_9 = arith.constant 0 : index
    %4 = vector.load %arg6[%c0_7, %c0_8, %c0_9] : memref<1x4x4xi32, #tpu.memory_space<vmem>>, vector<1x4x4xi32>
    %5 = vector.shape_cast %4 : vector<1x4x4xi32> to vector<4x4xi32>
    %c0_10 = arith.constant 0 : index
    %c0_11 = arith.constant 0 : index
    %c0_12 = arith.constant 0 : index
    %6 = vector.load %arg7[%c0_10, %c0_11, %c0_12] : memref<1x4x4xi32, #tpu.memory_space<vmem>>, vector<1x4x4xi32>
    %7 = vector.shape_cast %6 : vector<1x4x4xi32> to vector<4x4xi32>
    %c0_13 = arith.constant 0 : index
    %c0_14 = arith.constant 0 : index
    %c0_15 = arith.constant 0 : index
    %c0_16 = arith.constant 0 : index
    %8 = vector.load %arg3[%c0_13, %c0_14, %c0_15, %c0_16] : memref<1x1x4x8xbf16, #tpu.memory_space<vmem>>, vector<1x1x4x8xbf16>
    %9 = vector.shape_cast %8 : vector<1x1x4x8xbf16> to vector<1x4x8xbf16>
    %c0_17 = arith.constant 0 : index
    %c0_18 = arith.constant 0 : index
    %c0_19 = arith.constant 0 : index
    %c0_20 = arith.constant 0 : index
    %10 = vector.load %arg5[%c0_17, %c0_18, %c0_19, %c0_20] : memref<1x1x4x8xbf16, #tpu.memory_space<vmem>>, vector<1x1x4x8xbf16>
    %11 = vector.shape_cast %10 : vector<1x1x4x8xbf16> to vector<1x4x8xbf16>
    %12 = vector.extract_strided_slice %1 {offsets = [0, 0, 0], sizes = [3, 4, 8], strides = [1, 1, 1]} : vector<4x4x8xbf16> to vector<3x4x8xbf16>
    %13 = tpu.concatenate %9, %12 in 0 : vector<1x4x8xbf16>, vector<3x4x8xbf16> -> vector<4x4x8xbf16>
    %14 = vector.extract_strided_slice %3 {offsets = [0, 0, 0], sizes = [3, 4, 8], strides = [1, 1, 1]} : vector<4x4x8xbf16> to vector<3x4x8xbf16>
    %15 = tpu.concatenate %11, %14 in 0 : vector<1x4x8xbf16>, vector<3x4x8xbf16> -> vector<4x4x8xbf16>
    %16 = arith.extf %1 : vector<4x4x8xbf16> to vector<4x4x8xf32>
    %17 = arith.mulf %16, %16 : vector<4x4x8xf32>
    %cst = arith.constant dense<0.000000e+00> : vector<4x4xf32>
    %18 = vector.multi_reduction <add>, %17, %cst [2] : vector<4x4x8xf32> to vector<4x4xf32>
    %19 = vector.shape_cast %18 : vector<4x4xf32> to vector<4x4x1xf32>
    %cst_21 = arith.constant 1.000000e-24 : f32
    %20 = vector.broadcast %cst_21 : f32 to vector<4x4x1xf32>
    %21 = arith.maximumf %19, %20 : vector<4x4x1xf32>
    %22 = math.rsqrt %21 : vector<4x4x1xf32>
    %23 = vector.broadcast %22 : vector<4x4x1xf32> to vector<4x4x8xf32>
    %24 = arith.mulf %16, %23 : vector<4x4x8xf32>
    %25 = arith.truncf %24 : vector<4x4x8xf32> to vector<4x4x8xbf16>
    %cst_22 = arith.constant dense<0.000000e+00> : vector<4x4x4xf32>
    %26 = tpu.matmul %1, %25, %cst_22 {dimension_numbers = #tpu.dot_dimension_numbers<[2], [2], [1], [1], [0, 0, 0, 1, 1, 1], [0], [0]>} : vector<4x4x8xbf16>, vector<4x4x8xbf16>, vector<4x4x4xf32> -> vector<4x4x4xf32>
    %cst_23 = arith.constant 0.353553385 : f32
    %27 = vector.broadcast %cst_23 : f32 to vector<4x4x4xf32>
    %28 = arith.mulf %26, %27 : vector<4x4x4xf32>
    %29 = vector.shape_cast %5 : vector<4x4xi32> to vector<4x4x1xi32>
    %30 = vector.shape_cast %5 : vector<4x4xi32> to vector<4x1x4xi32>
    %31 = vector.broadcast %29 : vector<4x4x1xi32> to vector<4x4x4xi32>
    %32 = vector.broadcast %30 : vector<4x1x4xi32> to vector<4x4x4xi32>
    %33 = arith.cmpi eq, %31, %32 : vector<4x4x4xi32>
    %cst_24 = arith.constant -5.000000e+04 : f32
    %34 = vector.broadcast %cst_24 : f32 to vector<4x4x4xf32>
    %35 = arith.select %33, %34, %28 : vector<4x4x4xi1>, vector<4x4x4xf32>
    %cst_25 = arith.constant dense<0xFF800000> : vector<4x4xf32>
    %36 = vector.multi_reduction <maximumf>, %35, %cst_25 [2] : vector<4x4x4xf32> to vector<4x4xf32>
    %37 = vector.shape_cast %36 : vector<4x4xf32> to vector<4x4x1xf32>
    %38 = vector.broadcast %37 : vector<4x4x1xf32> to vector<4x4x4xf32>
    %39 = arith.subf %35, %38 : vector<4x4x4xf32>
    %40 = math.exp %39 : vector<4x4x4xf32>
    %cst_26 = arith.constant dense<0.000000e+00> : vector<4x4xf32>
    %41 = vector.multi_reduction <add>, %40, %cst_26 [2] : vector<4x4x4xf32> to vector<4x4xf32>
    %42 = arith.truncf %40 : vector<4x4x4xf32> to vector<4x4x4xbf16>
    %cst_27 = arith.constant dense<0.000000e+00> : vector<4x4x8xf32>
    %43 = tpu.matmul %42, %3, %cst_27 {dimension_numbers = #tpu.dot_dimension_numbers<[2], [1], [1], [2], [0, 0, 0, 1, 1, 2], [0], [0]>} : vector<4x4x4xbf16>, vector<4x4x8xbf16>, vector<4x4x8xf32> -> vector<4x4x8xf32>
    %44 = arith.extf %13 : vector<4x4x8xbf16> to vector<4x4x8xf32>
    %45 = arith.mulf %44, %44 : vector<4x4x8xf32>
    %cst_28 = arith.constant dense<0.000000e+00> : vector<4x4xf32>
    %46 = vector.multi_reduction <add>, %45, %cst_28 [2] : vector<4x4x8xf32> to vector<4x4xf32>
    %47 = vector.shape_cast %46 : vector<4x4xf32> to vector<4x4x1xf32>
    %cst_29 = arith.constant 1.000000e-24 : f32
    %48 = vector.broadcast %cst_29 : f32 to vector<4x4x1xf32>
    %49 = arith.maximumf %47, %48 : vector<4x4x1xf32>
    %50 = math.rsqrt %49 : vector<4x4x1xf32>
    %51 = vector.broadcast %50 : vector<4x4x1xf32> to vector<4x4x8xf32>
    %52 = arith.mulf %44, %51 : vector<4x4x8xf32>
    %53 = arith.truncf %52 : vector<4x4x8xf32> to vector<4x4x8xbf16>
    %cst_30 = arith.constant dense<0.000000e+00> : vector<4x4x4xf32>
    %54 = tpu.matmul %1, %53, %cst_30 {dimension_numbers = #tpu.dot_dimension_numbers<[2], [2], [1], [1], [0, 0, 0, 1, 1, 1], [0], [0]>} : vector<4x4x8xbf16>, vector<4x4x8xbf16>, vector<4x4x4xf32> -> vector<4x4x4xf32>
    %cst_31 = arith.constant 0.353553385 : f32
    %55 = vector.broadcast %cst_31 : f32 to vector<4x4x4xf32>
    %56 = arith.mulf %54, %55 : vector<4x4x4xf32>
    %57 = vector.shape_cast %5 : vector<4x4xi32> to vector<4x4x1xi32>
    %58 = vector.shape_cast %7 : vector<4x4xi32> to vector<4x1x4xi32>
    %59 = vector.broadcast %57 : vector<4x4x1xi32> to vector<4x4x4xi32>
    %60 = vector.broadcast %58 : vector<4x1x4xi32> to vector<4x4x4xi32>
    %61 = arith.cmpi eq, %59, %60 : vector<4x4x4xi32>
    %cst_32 = arith.constant -5.000000e+04 : f32
    %62 = vector.broadcast %cst_32 : f32 to vector<4x4x4xf32>
    %63 = arith.select %61, %62, %56 : vector<4x4x4xi1>, vector<4x4x4xf32>
    %cst_33 = arith.constant dense<0xFF800000> : vector<4x4xf32>
    %64 = vector.multi_reduction <maximumf>, %63, %cst_33 [2] : vector<4x4x4xf32> to vector<4x4xf32>
    %65 = arith.maximumf %36, %64 : vector<4x4xf32>
    %66 = arith.subf %36, %65 : vector<4x4xf32>
    %67 = math.exp %66 : vector<4x4xf32>
    %68 = vector.shape_cast %65 : vector<4x4xf32> to vector<4x4x1xf32>
    %69 = vector.broadcast %68 : vector<4x4x1xf32> to vector<4x4x4xf32>
    %70 = arith.subf %63, %69 : vector<4x4x4xf32>
    %71 = math.exp %70 : vector<4x4x4xf32>
    %72 = arith.mulf %67, %41 : vector<4x4xf32>
    %cst_34 = arith.constant dense<0.000000e+00> : vector<4x4xf32>
    %73 = vector.multi_reduction <add>, %71, %cst_34 [2] : vector<4x4x4xf32> to vector<4x4xf32>
    %74 = arith.addf %72, %73 : vector<4x4xf32>
    %75 = vector.shape_cast %67 : vector<4x4xf32> to vector<4x4x1xf32>
    %76 = vector.broadcast %75 : vector<4x4x1xf32> to vector<4x4x8xf32>
    %77 = arith.mulf %76, %43 : vector<4x4x8xf32>
    %78 = arith.truncf %71 : vector<4x4x4xf32> to vector<4x4x4xbf16>
    %cst_35 = arith.constant dense<0.000000e+00> : vector<4x4x8xf32>
    %79 = tpu.matmul %78, %15, %cst_35 {dimension_numbers = #tpu.dot_dimension_numbers<[2], [1], [1], [2], [0, 0, 0, 1, 1, 2], [0], [0]>} : vector<4x4x4xbf16>, vector<4x4x8xbf16>, vector<4x4x8xf32> -> vector<4x4x8xf32>
    %80 = arith.addf %77, %79 : vector<4x4x8xf32>
    %81 = tpu.reciprocal %74 {approx = true} : vector<4x4xf32> -> vector<4x4xf32>
    %82 = vector.shape_cast %81 : vector<4x4xf32> to vector<4x4x1xf32>
    %83 = vector.broadcast %82 : vector<4x4x1xf32> to vector<4x4x8xf32>
    %84 = arith.mulf %80, %83 : vector<4x4x8xf32>
    %85 = arith.truncf %84 : vector<4x4x8xf32> to vector<4x4x8xbf16>
    %c0_36 = arith.constant 0 : index
    %c0_37 = arith.constant 0 : index
    %c0_38 = arith.constant 0 : index
    %c0_39 = arith.constant 0 : index
    %86 = vector.load %arg8[%c0_36, %c0_37, %c0_38, %c0_39] : memref<1x4x4x8xbf16, #tpu.memory_space<vmem>>, vector<1x4x4x8xbf16>
    %87 = vector.shape_cast %86 : vector<1x4x4x8xbf16> to vector<4x4x8xbf16>
    %88 = vector.shape_cast %85 : vector<4x4x8xbf16> to vector<1x4x4x8xbf16>
    tpu.vector_store %arg8[%c0_36, %c0_37, %c0_38, %c0_39], %88 {strides = array<i32>} : memref<1x4x4x8xbf16, #tpu.memory_space<vmem>>, vector<1x4x4x8xbf16>,
    %89 = math.log %74 : vector<4x4xf32>
    %90 = arith.addf %65, %89 : vector<4x4xf32>
    %c0_40 = arith.constant 0 : index
    %c0_41 = arith.constant 0 : index
    %c0_42 = arith.constant 0 : index
    %91 = vector.load %arg9[%c0_40, %c0_41, %c0_42] : memref<1x4x4xf32, #tpu.memory_space<vmem>>, vector<1x4x4xf32>
    %92 = vector.shape_cast %91 : vector<1x4x4xf32> to vector<4x4xf32>
    %93 = vector.shape_cast %90 : vector<4x4xf32> to vector<1x4x4xf32>
    tpu.vector_store %arg9[%c0_40, %c0_41, %c0_42], %93 {strides = array<i32>} : memref<1x4x4xf32, #tpu.memory_space<vmem>>, vector<1x4x4xf32>,
    return
  }
  func.func @transform_0(%arg0: i32, %arg1: i32) -> (i32, i32, i32, i32) {
    %c0_i32 = arith.constant 0 : i32
    %c0_i32_0 = arith.constant 0 : i32
    %c0_i32_1 = arith.constant 0 : i32
    return %arg0, %arg1, %c0_i32, %c0_i32_0 : i32, i32, i32, i32
  }
  func.func @transform_1(%arg0: i32, %arg1: i32) -> (i32, i32, i32, i32) {
    %c4_i32 = arith.constant 4 : i32
    %0 = arith.muli %arg1, %c4_i32 : i32
    %c1_i32 = arith.constant 1 : i32
    %1 = arith.subi %0, %c1_i32 : i32
    %c4_i32_0 = arith.constant 4 : i32
    %c0_i32 = arith.constant 0 : i32
    %2 = arith.cmpi eq, %c4_i32_0, %c0_i32 : i32
    %c1_i32_1 = arith.constant 1 : i32
    %3 = arith.select %2, %c1_i32_1, %c4_i32_0 : i32
    %4 = arith.remsi %1, %3 : i32
    %c0_i32_2 = arith.constant 0 : i32
    %5 = arith.cmpi ne, %4, %c0_i32_2 : i32
    %c0_i32_3 = arith.constant 0 : i32
    %6 = arith.cmpi slt, %4, %c0_i32_3 : i32
    %c0_i32_4 = arith.constant 0 : i32
    %7 = arith.cmpi slt, %3, %c0_i32_4 : i32
    %8 = arith.xori %6, %7 : i1
    %9 = arith.andi %8, %5 : i1
    %10 = arith.addi %4, %3 : i32
    %11 = arith.select %9, %10, %4 : i32
    %c0_i32_5 = arith.constant 0 : i32
    %c0_i32_6 = arith.constant 0 : i32
    %c0_i32_7 = arith.constant 0 : i32
    return %arg0, %11, %c0_i32_5, %c0_i32_6 : i32, i32, i32, i32
  }
  func.func @transform_2(%arg0: i32, %arg1: i32) -> (i32, i32, i32, i32) {
    %c0_i32 = arith.constant 0 : i32
    %c0_i32_0 = arith.constant 0 : i32
    %c0_i32_1 = arith.constant 0 : i32
    return %arg0, %arg1, %c0_i32, %c0_i32_0 : i32, i32, i32, i32
  }
  func.func @transform_3(%arg0: i32, %arg1: i32) -> (i32, i32, i32, i32) {
    %c4_i32 = arith.constant 4 : i32
    %0 = arith.muli %arg1, %c4_i32 : i32
    %c1_i32 = arith.constant 1 : i32
    %1 = arith.subi %0, %c1_i32 : i32
    %c4_i32_0 = arith.constant 4 : i32
    %c0_i32 = arith.constant 0 : i32
    %2 = arith.cmpi eq, %c4_i32_0, %c0_i32 : i32
    %c1_i32_1 = arith.constant 1 : i32
    %3 = arith.select %2, %c1_i32_1, %c4_i32_0 : i32
    %4 = arith.remsi %1, %3 : i32
    %c0_i32_2 = arith.constant 0 : i32
    %5 = arith.cmpi ne, %4, %c0_i32_2 : i32
    %c0_i32_3 = arith.constant 0 : i32
    %6 = arith.cmpi slt, %4, %c0_i32_3 : i32
    %c0_i32_4 = arith.constant 0 : i32
    %7 = arith.cmpi slt, %3, %c0_i32_4 : i32
    %8 = arith.xori %6, %7 : i1
    %9 = arith.andi %8, %5 : i1
    %10 = arith.addi %4, %3 : i32
    %11 = arith.select %9, %10, %4 : i32
    %c0_i32_5 = arith.constant 0 : i32
    %c0_i32_6 = arith.constant 0 : i32
    %c0_i32_7 = arith.constant 0 : i32
    return %arg0, %11, %c0_i32_5, %c0_i32_6 : i32, i32, i32, i32
  }
  func.func @transform_4(%arg0: i32, %arg1: i32) -> (i32, i32, i32) {
    %c0_i32 = arith.constant 0 : i32
    %c0_i32_0 = arith.constant 0 : i32
    return %arg0, %arg1, %c0_i32 : i32, i32, i32
  }
  func.func @transform_5(%arg0: i32, %arg1: i32) -> (i32, i32, i32) {
    %c0_i32 = arith.constant 0 : i32
    %c0_i32_0 = arith.constant 0 : i32
    return %arg0, %arg1, %c0_i32 : i32, i32, i32
  }
  func.func @transform_6(%arg0: i32, %arg1: i32) -> (i32, i32, i32, i32) {
    %c0_i32 = arith.constant 0 : i32
    %c0_i32_0 = arith.constant 0 : i32
    %c0_i32_1 = arith.constant 0 : i32
    return %arg0, %arg1, %c0_i32, %c0_i32_0 : i32, i32, i32, i32
  }
  func.func @transform_7(%arg0: i32, %arg1: i32) -> (i32, i32, i32) {
    %c0_i32 = arith.constant 0 : i32
    %c0_i32_0 = arith.constant 0 : i32
    return %arg0, %arg1, %c0_i32 : i32, i32, i32
  }
}

module attributes {stable_mosaic.version = 11 : i64} {
  func.func @_combine_rounds_kernel(%arg0: i32, %arg1: i32, %arg2: memref<1x2x8x8xbf16, #tpu.memory_space<vmem>>, %arg3: memref<1x2x8xf32, #tpu.memory_space<vmem>>, %arg4: memref<1x8x8xbf16, #tpu.memory_space<vmem>>) attributes {dimension_semantics = [#tpu.dimension_semantics<parallel>, #tpu.dimension_semantics<parallel>], iteration_bounds = array<i64: 8, 1>, scalar_prefetch = 0 : i64, scratch_operands = 0 : i64, tpu.core_type = #tpu.core_type<tc>, window_params = [{transform_indices = @transform_0, window_bounds = array<i64: 1, 2, 8, 8>}, {transform_indices = @transform_1, window_bounds = array<i64: 1, 2, 8>}, {transform_indices = @transform_2, window_bounds = array<i64: 1, 8, 8>}]} {
    %c0 = arith.constant 0 : index
    %c0_0 = arith.constant 0 : index
    %c0_1 = arith.constant 0 : index
    %c0_2 = arith.constant 0 : index
    %0 = vector.load %arg2[%c0, %c0_0, %c0_1, %c0_2] : memref<1x2x8x8xbf16, #tpu.memory_space<vmem>>, vector<1x2x8x8xbf16>
    %1 = vector.shape_cast %0 : vector<1x2x8x8xbf16> to vector<2x8x8xbf16>
    %2 = arith.extf %1 : vector<2x8x8xbf16> to vector<2x8x8xf32>
    %c0_3 = arith.constant 0 : index
    %c0_4 = arith.constant 0 : index
    %c0_5 = arith.constant 0 : index
    %3 = vector.load %arg3[%c0_3, %c0_4, %c0_5] : memref<1x2x8xf32, #tpu.memory_space<vmem>>, vector<1x2x8xf32>
    %4 = vector.shape_cast %3 : vector<1x2x8xf32> to vector<2x8xf32>
    %cst = arith.constant dense<0xFF800000> : vector<8xf32>
    %5 = vector.multi_reduction <maximumf>, %4, %cst [0] : vector<2x8xf32> to vector<8xf32>
    %6 = vector.shape_cast %5 : vector<8xf32> to vector<1x8xf32>
    %7 = vector.broadcast %6 : vector<1x8xf32> to vector<2x8xf32>
    %8 = arith.subf %4, %7 : vector<2x8xf32>
    %9 = math.exp %8 : vector<2x8xf32>
    %cst_6 = arith.constant dense<0.000000e+00> : vector<8xf32>
    %10 = vector.multi_reduction <add>, %9, %cst_6 [0] : vector<2x8xf32> to vector<8xf32>
    %11 = vector.shape_cast %10 : vector<8xf32> to vector<1x8xf32>
    %12 = vector.broadcast %11 : vector<1x8xf32> to vector<2x8xf32>
    %13 = arith.divf %9, %12 : vector<2x8xf32>
    %14 = vector.shape_cast %13 : vector<2x8xf32> to vector<2x8x1xf32>
    %15 = vector.broadcast %14 : vector<2x8x1xf32> to vector<2x8x8xf32>
    %16 = arith.mulf %2, %15 : vector<2x8x8xf32>
    %cst_7 = arith.constant dense<0.000000e+00> : vector<8x8xf32>
    %17 = vector.multi_reduction <add>, %16, %cst_7 [0] : vector<2x8x8xf32> to vector<8x8xf32>
    %18 = arith.truncf %17 : vector<8x8xf32> to vector<8x8xbf16>
    %c0_8 = arith.constant 0 : index
    %c0_9 = arith.constant 0 : index
    %c0_10 = arith.constant 0 : index
    %19 = vector.load %arg4[%c0_8, %c0_9, %c0_10] : memref<1x8x8xbf16, #tpu.memory_space<vmem>>, vector<1x8x8xbf16>
    %20 = vector.shape_cast %19 : vector<1x8x8xbf16> to vector<8x8xbf16>
    %21 = vector.shape_cast %18 : vector<8x8xbf16> to vector<1x8x8xbf16>
    tpu.vector_store %arg4[%c0_8, %c0_9, %c0_10], %21 {strides = array<i32>} : memref<1x8x8xbf16, #tpu.memory_space<vmem>>, vector<1x8x8xbf16>,
    return
  }
  func.func @transform_0(%arg0: i32, %arg1: i32) -> (i32, i32, i32, i32) {
    %c0_i32 = arith.constant 0 : i32
    %c0_i32_0 = arith.constant 0 : i32
    %c0_i32_1 = arith.constant 0 : i32
    return %arg0, %c0_i32, %arg1, %c0_i32_0 : i32, i32, i32, i32
  }
  func.func @transform_1(%arg0: i32, %arg1: i32) -> (i32, i32, i32) {
    %c0_i32 = arith.constant 0 : i32
    %c0_i32_0 = arith.constant 0 : i32
    return %arg0, %c0_i32, %arg1 : i32, i32, i32
  }
  func.func @transform_2(%arg0: i32, %arg1: i32) -> (i32, i32, i32) {
    %c0_i32 = arith.constant 0 : i32
    %c0_i32_0 = arith.constant 0 : i32
    return %arg0, %arg1, %c0_i32 : i32, i32, i32
  }
}

module attributes {stable_mosaic.version = 11 : i64} {
  func.func @_post_attn_kernel(%arg0: i32, %arg1: memref<16x32xbf16, #tpu.memory_space<vmem>>, %arg2: memref<16x32xf32, #tpu.memory_space<vmem>>, %arg3: memref<32x32xbf16, #tpu.memory_space<vmem>>, %arg4: memref<1x32xf32, #tpu.memory_space<vmem>>, %arg5: memref<1x32xf32, #tpu.memory_space<vmem>>, %arg6: memref<1x32xf32, #tpu.memory_space<vmem>>, %arg7: memref<32x64xbf16, #tpu.memory_space<vmem>>, %arg8: memref<1x64xf32, #tpu.memory_space<vmem>>, %arg9: memref<64x32xbf16, #tpu.memory_space<vmem>>, %arg10: memref<1x32xf32, #tpu.memory_space<vmem>>, %arg11: memref<1x32xf32, #tpu.memory_space<vmem>>, %arg12: memref<1x32xf32, #tpu.memory_space<vmem>>, %arg13: memref<16x32xf32, #tpu.memory_space<vmem>>) attributes {dimension_semantics = [#tpu.dimension_semantics<parallel>], iteration_bounds = array<i64: 1>, scalar_prefetch = 0 : i64, scratch_operands = 0 : i64, tpu.core_type = #tpu.core_type<tc>, window_params = [{transform_indices = @transform_0, window_bounds = array<i64: 16, 32>}, {transform_indices = @transform_1, window_bounds = array<i64: 16, 32>}, {pipeline_mode = #tpu.pipeline_mode<synchronous>, transform_indices = @transform_2, window_bounds = array<i64: 32, 32>}, {pipeline_mode = #tpu.pipeline_mode<synchronous>, transform_indices = @transform_3, window_bounds = array<i64: 1, 32>}, {pipeline_mode = #tpu.pipeline_mode<synchronous>, transform_indices = @transform_4, window_bounds = array<i64: 1, 32>}, {pipeline_mode = #tpu.pipeline_mode<synchronous>, transform_indices = @transform_5, window_bounds = array<i64: 1, 32>}, {pipeline_mode = #tpu.pipeline_mode<synchronous>, transform_indices = @transform_6, window_bounds = array<i64: 32, 64>}, {pipeline_mode = #tpu.pipeline_mode<synchronous>, transform_indices = @transform_7, window_bounds = array<i64: 1, 64>}, {pipeline_mode = #tpu.pipeline_mode<synchronous>, transform_indices = @transform_8, window_bounds = array<i64: 64, 32>}, {pipeline_mode = #tpu.pipeline_mode<synchronous>, transform_indices = @transform_9, window_bounds = array<i64: 1, 32>}, {pipeline_mode = #tpu.pipeline_mode<synchronous>, transform_indices = @transform_10, window_bounds = array<i64: 1, 32>}, {pipeline_mode = #tpu.pipeline_mode<synchronous>, transform_indices = @transform_11, window_bounds = array<i64: 1, 32>}, {transform_indices = @transform_12, window_bounds = array<i64: 16, 32>}]} {
    %c0 = arith.constant 0 : index
    %c0_0 = arith.constant 0 : index
    %0 = vector.load %arg2[%c0, %c0_0] : memref<16x32xf32, #tpu.memory_space<vmem>>, vector<16x32xf32>
    %c0_1 = arith.constant 0 : index
    %c0_2 = arith.constant 0 : index
    %1 = vector.load %arg1[%c0_1, %c0_2] : memref<16x32xbf16, #tpu.memory_space<vmem>>, vector<16x32xbf16>
    %c0_3 = arith.constant 0 : index
    %c0_4 = arith.constant 0 : index
    %2 = vector.load %arg3[%c0_3, %c0_4] : memref<32x32xbf16, #tpu.memory_space<vmem>>, vector<32x32xbf16>
    %cst = arith.constant dense<0.000000e+00> : vector<16x32xf32>
    %3 = tpu.matmul %1, %2, %cst {dimension_numbers = #tpu.dot_dimension_numbers<[1], [0], [0], [1], [0, 0, 1, 1], [], []>} : vector<16x32xbf16>, vector<32x32xbf16>, vector<16x32xf32> -> vector<16x32xf32>
    %c0_5 = arith.constant 0 : index
    %c0_6 = arith.constant 0 : index
    %4 = vector.load %arg4[%c0_5, %c0_6] : memref<1x32xf32, #tpu.memory_space<vmem>>, vector<1x32xf32>
    %5 = vector.broadcast %4 : vector<1x32xf32> to vector<16x32xf32>
    %6 = arith.addf %3, %5 : vector<16x32xf32>
    %7 = arith.addf %6, %0 : vector<16x32xf32>
    %cst_7 = arith.constant dense<0.000000e+00> : vector<16xf32>
    %8 = vector.multi_reduction <add>, %7, %cst_7 [1] : vector<16x32xf32> to vector<16xf32>
    %9 = vector.shape_cast %8 : vector<16xf32> to vector<16x1xf32>
    %cst_8 = arith.constant 3.200000e+01 : f32
    %10 = vector.broadcast %cst_8 : f32 to vector<16x1xf32>
    %11 = arith.divf %9, %10 : vector<16x1xf32>
    %12 = vector.broadcast %11 : vector<16x1xf32> to vector<16x32xf32>
    %13 = arith.subf %7, %12 : vector<16x32xf32>
    %14 = arith.mulf %13, %13 : vector<16x32xf32>
    %cst_9 = arith.constant dense<0.000000e+00> : vector<16xf32>
    %15 = vector.multi_reduction <add>, %14, %cst_9 [1] : vector<16x32xf32> to vector<16xf32>
    %16 = vector.shape_cast %15 : vector<16xf32> to vector<16x1xf32>
    %cst_10 = arith.constant 3.200000e+01 : f32
    %17 = vector.broadcast %cst_10 : f32 to vector<16x1xf32>
    %18 = arith.divf %16, %17 : vector<16x1xf32>
    %19 = vector.broadcast %11 : vector<16x1xf32> to vector<16x32xf32>
    %20 = arith.subf %7, %19 : vector<16x32xf32>
    %cst_11 = arith.constant 9.99999974E-6 : f32
    %21 = vector.broadcast %cst_11 : f32 to vector<16x1xf32>
    %22 = arith.addf %18, %21 : vector<16x1xf32>
    %23 = math.rsqrt %22 : vector<16x1xf32>
    %24 = vector.broadcast %23 : vector<16x1xf32> to vector<16x32xf32>
    %25 = arith.mulf %20, %24 : vector<16x32xf32>
    %c0_12 = arith.constant 0 : index
    %c0_13 = arith.constant 0 : index
    %26 = vector.load %arg5[%c0_12, %c0_13] : memref<1x32xf32, #tpu.memory_space<vmem>>, vector<1x32xf32>
    %27 = vector.broadcast %26 : vector<1x32xf32> to vector<16x32xf32>
    %28 = arith.mulf %25, %27 : vector<16x32xf32>
    %c0_14 = arith.constant 0 : index
    %c0_15 = arith.constant 0 : index
    %29 = vector.load %arg6[%c0_14, %c0_15] : memref<1x32xf32, #tpu.memory_space<vmem>>, vector<1x32xf32>
    %30 = vector.broadcast %29 : vector<1x32xf32> to vector<16x32xf32>
    %31 = arith.addf %28, %30 : vector<16x32xf32>
    %32 = arith.truncf %31 : vector<16x32xf32> to vector<16x32xbf16>
    %c0_16 = arith.constant 0 : index
    %c0_17 = arith.constant 0 : index
    %33 = vector.load %arg7[%c0_16, %c0_17] : memref<32x64xbf16, #tpu.memory_space<vmem>>, vector<32x64xbf16>
    %cst_18 = arith.constant dense<0.000000e+00> : vector<16x64xf32>
    %34 = tpu.matmul %32, %33, %cst_18 {dimension_numbers = #tpu.dot_dimension_numbers<[1], [0], [0], [1], [0, 0, 1, 1], [], []>} : vector<16x32xbf16>, vector<32x64xbf16>, vector<16x64xf32> -> vector<16x64xf32>
    %c0_19 = arith.constant 0 : index
    %c0_20 = arith.constant 0 : index
    %35 = vector.load %arg8[%c0_19, %c0_20] : memref<1x64xf32, #tpu.memory_space<vmem>>, vector<1x64xf32>
    %36 = vector.broadcast %35 : vector<1x64xf32> to vector<16x64xf32>
    %37 = arith.addf %34, %36 : vector<16x64xf32>
    %cst_21 = arith.constant 0.000000e+00 : f32
    %38 = vector.broadcast %cst_21 : f32 to vector<16x64xf32>
    %39 = arith.maximumf %37, %38 : vector<16x64xf32>
    %40 = arith.truncf %39 : vector<16x64xf32> to vector<16x64xbf16>
    %c0_22 = arith.constant 0 : index
    %c0_23 = arith.constant 0 : index
    %41 = vector.load %arg9[%c0_22, %c0_23] : memref<64x32xbf16, #tpu.memory_space<vmem>>, vector<64x32xbf16>
    %cst_24 = arith.constant dense<0.000000e+00> : vector<16x32xf32>
    %42 = tpu.matmul %40, %41, %cst_24 {dimension_numbers = #tpu.dot_dimension_numbers<[1], [0], [0], [1], [0, 0, 1, 1], [], []>} : vector<16x64xbf16>, vector<64x32xbf16>, vector<16x32xf32> -> vector<16x32xf32>
    %c0_25 = arith.constant 0 : index
    %c0_26 = arith.constant 0 : index
    %43 = vector.load %arg10[%c0_25, %c0_26] : memref<1x32xf32, #tpu.memory_space<vmem>>, vector<1x32xf32>
    %44 = vector.broadcast %43 : vector<1x32xf32> to vector<16x32xf32>
    %45 = arith.addf %42, %44 : vector<16x32xf32>
    %46 = arith.addf %45, %31 : vector<16x32xf32>
    %cst_27 = arith.constant dense<0.000000e+00> : vector<16xf32>
    %47 = vector.multi_reduction <add>, %46, %cst_27 [1] : vector<16x32xf32> to vector<16xf32>
    %48 = vector.shape_cast %47 : vector<16xf32> to vector<16x1xf32>
    %cst_28 = arith.constant 3.200000e+01 : f32
    %49 = vector.broadcast %cst_28 : f32 to vector<16x1xf32>
    %50 = arith.divf %48, %49 : vector<16x1xf32>
    %51 = vector.broadcast %50 : vector<16x1xf32> to vector<16x32xf32>
    %52 = arith.subf %46, %51 : vector<16x32xf32>
    %53 = arith.mulf %52, %52 : vector<16x32xf32>
    %cst_29 = arith.constant dense<0.000000e+00> : vector<16xf32>
    %54 = vector.multi_reduction <add>, %53, %cst_29 [1] : vector<16x32xf32> to vector<16xf32>
    %55 = vector.shape_cast %54 : vector<16xf32> to vector<16x1xf32>
    %cst_30 = arith.constant 3.200000e+01 : f32
    %56 = vector.broadcast %cst_30 : f32 to vector<16x1xf32>
    %57 = arith.divf %55, %56 : vector<16x1xf32>
    %58 = vector.broadcast %50 : vector<16x1xf32> to vector<16x32xf32>
    %59 = arith.subf %46, %58 : vector<16x32xf32>
    %cst_31 = arith.constant 9.99999997E-7 : f32
    %60 = vector.broadcast %cst_31 : f32 to vector<16x1xf32>
    %61 = arith.addf %57, %60 : vector<16x1xf32>
    %62 = math.rsqrt %61 : vector<16x1xf32>
    %63 = vector.broadcast %62 : vector<16x1xf32> to vector<16x32xf32>
    %64 = arith.mulf %59, %63 : vector<16x32xf32>
    %c0_32 = arith.constant 0 : index
    %c0_33 = arith.constant 0 : index
    %65 = vector.load %arg11[%c0_32, %c0_33] : memref<1x32xf32, #tpu.memory_space<vmem>>, vector<1x32xf32>
    %66 = vector.broadcast %65 : vector<1x32xf32> to vector<16x32xf32>
    %67 = arith.mulf %64, %66 : vector<16x32xf32>
    %c0_34 = arith.constant 0 : index
    %c0_35 = arith.constant 0 : index
    %68 = vector.load %arg12[%c0_34, %c0_35] : memref<1x32xf32, #tpu.memory_space<vmem>>, vector<1x32xf32>
    %69 = vector.broadcast %68 : vector<1x32xf32> to vector<16x32xf32>
    %70 = arith.addf %67, %69 : vector<16x32xf32>
    %c0_36 = arith.constant 0 : index
    %c0_37 = arith.constant 0 : index
    %71 = vector.load %arg13[%c0_36, %c0_37] : memref<16x32xf32, #tpu.memory_space<vmem>>, vector<16x32xf32>
    tpu.vector_store %arg13[%c0_36, %c0_37], %70 {strides = array<i32>} : memref<16x32xf32, #tpu.memory_space<vmem>>, vector<16x32xf32>,
    return
  }
  func.func @transform_0(%arg0: i32) -> (i32, i32) {
    %c0_i32 = arith.constant 0 : i32
    %c0_i32_0 = arith.constant 0 : i32
    return %arg0, %c0_i32 : i32, i32
  }
  func.func @transform_1(%arg0: i32) -> (i32, i32) {
    %c0_i32 = arith.constant 0 : i32
    %c0_i32_0 = arith.constant 0 : i32
    return %arg0, %c0_i32 : i32, i32
  }
  func.func @transform_2(%arg0: i32) -> (i32, i32) {
    %c0_i32 = arith.constant 0 : i32
    %c0_i32_0 = arith.constant 0 : i32
    %c0_i32_1 = arith.constant 0 : i32
    return %c0_i32, %c0_i32_0 : i32, i32
  }
  func.func @transform_3(%arg0: i32) -> (i32, i32) {
    %c0_i32 = arith.constant 0 : i32
    %c0_i32_0 = arith.constant 0 : i32
    %c0_i32_1 = arith.constant 0 : i32
    return %c0_i32, %c0_i32_0 : i32, i32
  }
  func.func @transform_4(%arg0: i32) -> (i32, i32) {
    %c0_i32 = arith.constant 0 : i32
    %c0_i32_0 = arith.constant 0 : i32
    %c0_i32_1 = arith.constant 0 : i32
    return %c0_i32, %c0_i32_0 : i32, i32
  }
  func.func @transform_5(%arg0: i32) -> (i32, i32) {
    %c0_i32 = arith.constant 0 : i32
    %c0_i32_0 = arith.constant 0 : i32
    %c0_i32_1 = arith.constant 0 : i32
    return %c0_i32, %c0_i32_0 : i32, i32
  }
  func.func @transform_6(%arg0: i32) -> (i32, i32) {
    %c0_i32 = arith.constant 0 : i32
    %c0_i32_0 = arith.constant 0 : i32
    %c0_i32_1 = arith.constant 0 : i32
    return %c0_i32, %c0_i32_0 : i32, i32
  }
  func.func @transform_7(%arg0: i32) -> (i32, i32) {
    %c0_i32 = arith.constant 0 : i32
    %c0_i32_0 = arith.constant 0 : i32
    %c0_i32_1 = arith.constant 0 : i32
    return %c0_i32, %c0_i32_0 : i32, i32
  }
  func.func @transform_8(%arg0: i32) -> (i32, i32) {
    %c0_i32 = arith.constant 0 : i32
    %c0_i32_0 = arith.constant 0 : i32
    %c0_i32_1 = arith.constant 0 : i32
    return %c0_i32, %c0_i32_0 : i32, i32
  }
  func.func @transform_9(%arg0: i32) -> (i32, i32) {
    %c0_i32 = arith.constant 0 : i32
    %c0_i32_0 = arith.constant 0 : i32
    %c0_i32_1 = arith.constant 0 : i32
    return %c0_i32, %c0_i32_0 : i32, i32
  }
  func.func @transform_10(%arg0: i32) -> (i32, i32) {
    %c0_i32 = arith.constant 0 : i32
    %c0_i32_0 = arith.constant 0 : i32
    %c0_i32_1 = arith.constant 0 : i32
    return %c0_i32, %c0_i32_0 : i32, i32
  }
  func.func @transform_11(%arg0: i32) -> (i32, i32) {
    %c0_i32 = arith.constant 0 : i32
    %c0_i32_0 = arith.constant 0 : i32
    %c0_i32_1 = arith.constant 0 : i32
    return %c0_i32, %c0_i32_0 : i32, i32
  }
  func.func @transform_12(%arg0: i32) -> (i32, i32) {
    %c0_i32 = arith.constant 0 : i32
    %c0_i32_0 = arith.constant 0 : i32
    return %arg0, %c0_i32 : i32, i32
  }
}

module attributes {stable_mosaic.version = 11 : i64} {
  func.func @_post_attn_kernel(%arg0: i32, %arg1: memref<16x32xbf16, #tpu.memory_space<vmem>>, %arg2: memref<16x32xf32, #tpu.memory_space<vmem>>, %arg3: memref<32x32xbf16, #tpu.memory_space<vmem>>, %arg4: memref<1x32xf32, #tpu.memory_space<vmem>>, %arg5: memref<1x32xf32, #tpu.memory_space<vmem>>, %arg6: memref<1x32xf32, #tpu.memory_space<vmem>>, %arg7: memref<32x64xbf16, #tpu.memory_space<vmem>>, %arg8: memref<1x64xf32, #tpu.memory_space<vmem>>, %arg9: memref<64x32xbf16, #tpu.memory_space<vmem>>, %arg10: memref<1x32xf32, #tpu.memory_space<vmem>>, %arg11: memref<1x32xf32, #tpu.memory_space<vmem>>, %arg12: memref<1x32xf32, #tpu.memory_space<vmem>>, %arg13: memref<16x32xf32, #tpu.memory_space<vmem>>) attributes {dimension_semantics = [#tpu.dimension_semantics<parallel>], iteration_bounds = array<i64: 1>, scalar_prefetch = 0 : i64, scratch_operands = 0 : i64, tpu.core_type = #tpu.core_type<tc>, window_params = [{transform_indices = @transform_0, window_bounds = array<i64: 16, 32>}, {transform_indices = @transform_1, window_bounds = array<i64: 16, 32>}, {pipeline_mode = #tpu.pipeline_mode<synchronous>, transform_indices = @transform_2, window_bounds = array<i64: 32, 32>}, {pipeline_mode = #tpu.pipeline_mode<synchronous>, transform_indices = @transform_3, window_bounds = array<i64: 1, 32>}, {pipeline_mode = #tpu.pipeline_mode<synchronous>, transform_indices = @transform_4, window_bounds = array<i64: 1, 32>}, {pipeline_mode = #tpu.pipeline_mode<synchronous>, transform_indices = @transform_5, window_bounds = array<i64: 1, 32>}, {pipeline_mode = #tpu.pipeline_mode<synchronous>, transform_indices = @transform_6, window_bounds = array<i64: 32, 64>}, {pipeline_mode = #tpu.pipeline_mode<synchronous>, transform_indices = @transform_7, window_bounds = array<i64: 1, 64>}, {pipeline_mode = #tpu.pipeline_mode<synchronous>, transform_indices = @transform_8, window_bounds = array<i64: 64, 32>}, {pipeline_mode = #tpu.pipeline_mode<synchronous>, transform_indices = @transform_9, window_bounds = array<i64: 1, 32>}, {pipeline_mode = #tpu.pipeline_mode<synchronous>, transform_indices = @transform_10, window_bounds = array<i64: 1, 32>}, {pipeline_mode = #tpu.pipeline_mode<synchronous>, transform_indices = @transform_11, window_bounds = array<i64: 1, 32>}, {transform_indices = @transform_12, window_bounds = array<i64: 16, 32>}]} {
    %c0 = arith.constant 0 : index
    %c0_0 = arith.constant 0 : index
    %0 = vector.load %arg2[%c0, %c0_0] : memref<16x32xf32, #tpu.memory_space<vmem>>, vector<16x32xf32>
    %c0_1 = arith.constant 0 : index
    %c0_2 = arith.constant 0 : index
    %1 = vector.load %arg1[%c0_1, %c0_2] : memref<16x32xbf16, #tpu.memory_space<vmem>>, vector<16x32xbf16>
    %c0_3 = arith.constant 0 : index
    %c0_4 = arith.constant 0 : index
    %2 = vector.load %arg3[%c0_3, %c0_4] : memref<32x32xbf16, #tpu.memory_space<vmem>>, vector<32x32xbf16>
    %cst = arith.constant dense<0.000000e+00> : vector<16x32xf32>
    %3 = tpu.matmul %1, %2, %cst {dimension_numbers = #tpu.dot_dimension_numbers<[1], [0], [0], [1], [0, 0, 1, 1], [], []>} : vector<16x32xbf16>, vector<32x32xbf16>, vector<16x32xf32> -> vector<16x32xf32>
    %c0_5 = arith.constant 0 : index
    %c0_6 = arith.constant 0 : index
    %4 = vector.load %arg4[%c0_5, %c0_6] : memref<1x32xf32, #tpu.memory_space<vmem>>, vector<1x32xf32>
    %5 = vector.broadcast %4 : vector<1x32xf32> to vector<16x32xf32>
    %6 = arith.addf %3, %5 : vector<16x32xf32>
    %7 = arith.addf %6, %0 : vector<16x32xf32>
    %cst_7 = arith.constant dense<0.000000e+00> : vector<16xf32>
    %8 = vector.multi_reduction <add>, %7, %cst_7 [1] : vector<16x32xf32> to vector<16xf32>
    %9 = vector.shape_cast %8 : vector<16xf32> to vector<16x1xf32>
    %cst_8 = arith.constant 3.200000e+01 : f32
    %10 = vector.broadcast %cst_8 : f32 to vector<16x1xf32>
    %11 = arith.divf %9, %10 : vector<16x1xf32>
    %12 = vector.broadcast %11 : vector<16x1xf32> to vector<16x32xf32>
    %13 = arith.subf %7, %12 : vector<16x32xf32>
    %14 = arith.mulf %13, %13 : vector<16x32xf32>
    %cst_9 = arith.constant dense<0.000000e+00> : vector<16xf32>
    %15 = vector.multi_reduction <add>, %14, %cst_9 [1] : vector<16x32xf32> to vector<16xf32>
    %16 = vector.shape_cast %15 : vector<16xf32> to vector<16x1xf32>
    %cst_10 = arith.constant 3.200000e+01 : f32
    %17 = vector.broadcast %cst_10 : f32 to vector<16x1xf32>
    %18 = arith.divf %16, %17 : vector<16x1xf32>
    %19 = vector.broadcast %11 : vector<16x1xf32> to vector<16x32xf32>
    %20 = arith.subf %7, %19 : vector<16x32xf32>
    %cst_11 = arith.constant 9.99999974E-6 : f32
    %21 = vector.broadcast %cst_11 : f32 to vector<16x1xf32>
    %22 = arith.addf %18, %21 : vector<16x1xf32>
    %23 = math.rsqrt %22 : vector<16x1xf32>
    %24 = vector.broadcast %23 : vector<16x1xf32> to vector<16x32xf32>
    %25 = arith.mulf %20, %24 : vector<16x32xf32>
    %c0_12 = arith.constant 0 : index
    %c0_13 = arith.constant 0 : index
    %26 = vector.load %arg5[%c0_12, %c0_13] : memref<1x32xf32, #tpu.memory_space<vmem>>, vector<1x32xf32>
    %27 = vector.broadcast %26 : vector<1x32xf32> to vector<16x32xf32>
    %28 = arith.mulf %25, %27 : vector<16x32xf32>
    %c0_14 = arith.constant 0 : index
    %c0_15 = arith.constant 0 : index
    %29 = vector.load %arg6[%c0_14, %c0_15] : memref<1x32xf32, #tpu.memory_space<vmem>>, vector<1x32xf32>
    %30 = vector.broadcast %29 : vector<1x32xf32> to vector<16x32xf32>
    %31 = arith.addf %28, %30 : vector<16x32xf32>
    %32 = arith.truncf %31 : vector<16x32xf32> to vector<16x32xbf16>
    %c0_16 = arith.constant 0 : index
    %c0_17 = arith.constant 0 : index
    %33 = vector.load %arg7[%c0_16, %c0_17] : memref<32x64xbf16, #tpu.memory_space<vmem>>, vector<32x64xbf16>
    %cst_18 = arith.constant dense<0.000000e+00> : vector<16x64xf32>
    %34 = tpu.matmul %32, %33, %cst_18 {dimension_numbers = #tpu.dot_dimension_numbers<[1], [0], [0], [1], [0, 0, 1, 1], [], []>} : vector<16x32xbf16>, vector<32x64xbf16>, vector<16x64xf32> -> vector<16x64xf32>
    %c0_19 = arith.constant 0 : index
    %c0_20 = arith.constant 0 : index
    %35 = vector.load %arg8[%c0_19, %c0_20] : memref<1x64xf32, #tpu.memory_space<vmem>>, vector<1x64xf32>
    %36 = vector.broadcast %35 : vector<1x64xf32> to vector<16x64xf32>
    %37 = arith.addf %34, %36 : vector<16x64xf32>
    %cst_21 = arith.constant 0.000000e+00 : f32
    %38 = vector.broadcast %cst_21 : f32 to vector<16x64xf32>
    %39 = arith.maximumf %37, %38 : vector<16x64xf32>
    %40 = arith.truncf %39 : vector<16x64xf32> to vector<16x64xbf16>
    %c0_22 = arith.constant 0 : index
    %c0_23 = arith.constant 0 : index
    %41 = vector.load %arg9[%c0_22, %c0_23] : memref<64x32xbf16, #tpu.memory_space<vmem>>, vector<64x32xbf16>
    %cst_24 = arith.constant dense<0.000000e+00> : vector<16x32xf32>
    %42 = tpu.matmul %40, %41, %cst_24 {dimension_numbers = #tpu.dot_dimension_numbers<[1], [0], [0], [1], [0, 0, 1, 1], [], []>} : vector<16x64xbf16>, vector<64x32xbf16>, vector<16x32xf32> -> vector<16x32xf32>
    %c0_25 = arith.constant 0 : index
    %c0_26 = arith.constant 0 : index
    %43 = vector.load %arg10[%c0_25, %c0_26] : memref<1x32xf32, #tpu.memory_space<vmem>>, vector<1x32xf32>
    %44 = vector.broadcast %43 : vector<1x32xf32> to vector<16x32xf32>
    %45 = arith.addf %42, %44 : vector<16x32xf32>
    %46 = arith.addf %45, %31 : vector<16x32xf32>
    %cst_27 = arith.constant dense<0.000000e+00> : vector<16xf32>
    %47 = vector.multi_reduction <add>, %46, %cst_27 [1] : vector<16x32xf32> to vector<16xf32>
    %48 = vector.shape_cast %47 : vector<16xf32> to vector<16x1xf32>
    %cst_28 = arith.constant 3.200000e+01 : f32
    %49 = vector.broadcast %cst_28 : f32 to vector<16x1xf32>
    %50 = arith.divf %48, %49 : vector<16x1xf32>
    %51 = vector.broadcast %50 : vector<16x1xf32> to vector<16x32xf32>
    %52 = arith.subf %46, %51 : vector<16x32xf32>
    %53 = arith.mulf %52, %52 : vector<16x32xf32>
    %cst_29 = arith.constant dense<0.000000e+00> : vector<16xf32>
    %54 = vector.multi_reduction <add>, %53, %cst_29 [1] : vector<16x32xf32> to vector<16xf32>
    %55 = vector.shape_cast %54 : vector<16xf32> to vector<16x1xf32>
    %cst_30 = arith.constant 3.200000e+01 : f32
    %56 = vector.broadcast %cst_30 : f32 to vector<16x1xf32>
    %57 = arith.divf %55, %56 : vector<16x1xf32>
    %58 = vector.broadcast %50 : vector<16x1xf32> to vector<16x32xf32>
    %59 = arith.subf %46, %58 : vector<16x32xf32>
    %cst_31 = arith.constant 9.99999997E-7 : f32
    %60 = vector.broadcast %cst_31 : f32 to vector<16x1xf32>
    %61 = arith.addf %57, %60 : vector<16x1xf32>
    %62 = math.rsqrt %61 : vector<16x1xf32>
    %63 = vector.broadcast %62 : vector<16x1xf32> to vector<16x32xf32>
    %64 = arith.mulf %59, %63 : vector<16x32xf32>
    %c0_32 = arith.constant 0 : index
    %c0_33 = arith.constant 0 : index
    %65 = vector.load %arg11[%c0_32, %c0_33] : memref<1x32xf32, #tpu.memory_space<vmem>>, vector<1x32xf32>
    %66 = vector.broadcast %65 : vector<1x32xf32> to vector<16x32xf32>
    %67 = arith.mulf %64, %66 : vector<16x32xf32>
    %c0_34 = arith.constant 0 : index
    %c0_35 = arith.constant 0 : index
    %68 = vector.load %arg12[%c0_34, %c0_35] : memref<1x32xf32, #tpu.memory_space<vmem>>, vector<1x32xf32>
    %69 = vector.broadcast %68 : vector<1x32xf32> to vector<16x32xf32>
    %70 = arith.addf %67, %69 : vector<16x32xf32>
    %c0_36 = arith.constant 0 : index
    %c0_37 = arith.constant 0 : index
    %71 = vector.load %arg13[%c0_36, %c0_37] : memref<16x32xf32, #tpu.memory_space<vmem>>, vector<16x32xf32>
    tpu.vector_store %arg13[%c0_36, %c0_37], %70 {strides = array<i32>} : memref<16x32xf32, #tpu.memory_space<vmem>>, vector<16x32xf32>,
    return
  }
  func.func @transform_0(%arg0: i32) -> (i32, i32) {
    %c0_i32 = arith.constant 0 : i32
    %c0_i32_0 = arith.constant 0 : i32
    return %arg0, %c0_i32 : i32, i32
  }
  func.func @transform_1(%arg0: i32) -> (i32, i32) {
    %c0_i32 = arith.constant 0 : i32
    %c0_i32_0 = arith.constant 0 : i32
    return %arg0, %c0_i32 : i32, i32
  }
  func.func @transform_2(%arg0: i32) -> (i32, i32) {
    %c0_i32 = arith.constant 0 : i32
    %c0_i32_0 = arith.constant 0 : i32
    %c0_i32_1 = arith.constant 0 : i32
    return %c0_i32, %c0_i32_0 : i32, i32
  }
  func.func @transform_3(%arg0: i32) -> (i32, i32) {
    %c0_i32 = arith.constant 0 : i32
    %c0_i32_0 = arith.constant 0 : i32
    %c0_i32_1 = arith.constant 0 : i32
    return %c0_i32, %c0_i32_0 : i32, i32
  }
  func.func @transform_4(%arg0: i32) -> (i32, i32) {
    %c0_i32 = arith.constant 0 : i32
    %c0_i32_0 = arith.constant 0 : i32
    %c0_i32_1 = arith.constant 0 : i32
    return %c0_i32, %c0_i32_0 : i32, i32
  }
  func.func @transform_5(%arg0: i32) -> (i32, i32) {
    %c0_i32 = arith.constant 0 : i32
    %c0_i32_0 = arith.constant 0 : i32
    %c0_i32_1 = arith.constant 0 : i32
    return %c0_i32, %c0_i32_0 : i32, i32
  }
  func.func @transform_6(%arg0: i32) -> (i32, i32) {
    %c0_i32 = arith.constant 0 : i32
    %c0_i32_0 = arith.constant 0 : i32
    %c0_i32_1 = arith.constant 0 : i32
    return %c0_i32, %c0_i32_0 : i32, i32
  }
  func.func @transform_7(%arg0: i32) -> (i32, i32) {
    %c0_i32 = arith.constant 0 : i32
    %c0_i32_0 = arith.constant 0 : i32
    %c0_i32_1 = arith.constant 0 : i32
    return %c0_i32, %c0_i32_0 : i32, i32
  }
  func.func @transform_8(%arg0: i32) -> (i32, i32) {
    %c0_i32 = arith.constant 0 : i32
    %c0_i32_0 = arith.constant 0 : i32
    %c0_i32_1 = arith.constant 0 : i32
    return %c0_i32, %c0_i32_0 : i32, i32
  }
  func.func @transform_9(%arg0: i32) -> (i32, i32) {
    %c0_i32 = arith.constant 0 : i32
    %c0_i32_0 = arith.constant 0 : i32
    %c0_i32_1 = arith.constant 0 : i32
    return %c0_i32, %c0_i32_0 : i32, i32
  }
  func.func @transform_10(%arg0: i32) -> (i32, i32) {
    %c0_i32 = arith.constant 0 : i32
    %c0_i32_0 = arith.constant 0 : i32
    %c0_i32_1 = arith.constant 0 : i32
    return %c0_i32, %c0_i32_0 : i32, i32
  }
  func.func @transform_11(%arg0: i32) -> (i32, i32) {
    %c0_i32 = arith.constant 0 : i32
    %c0_i32_0 = arith.constant 0 : i32
    %c0_i32_1 = arith.constant 0 : i32
    return %c0_i32, %c0_i32_0 : i32, i32
  }
  func.func @transform_12(%arg0: i32) -> (i32, i32) {
    %c0_i32 = arith.constant 0 : i32
    %c0_i32_0 = arith.constant 0 : i32
    return %arg0, %c0_i32 : i32, i32
  }
}

</mosaic_0001>

<bundles_post_ra>
// kernel: reformer_encoder.8
= control target key start
LH: loop header
LB: loop body
LE: loop exit
PB: predicated region body
PF: predicated region fallthrough
CT: control target
= control target key end

     0   :  { %v113_v0 = vmov 0.0   ;;  %vm114_vm0 = vmmov 0   ;;  %vm31_vm1 = vcmask 261120   ;;  %vm84_vm2 = vcmask 519168   ;;  %s148_s1 = inlined_call_operand.vmem [shape: bf16[32,64], index: 1, kind: input, shape index: {}]   ;;  %s149_s0 = inlined_call_operand.vmem [shape: f32[16,32], index: 0, kind: input, shape index: {}]   ;;  %s150_s2 = inlined_call_operand.vmem [shape: bf16[16,64], index: 2, kind: output, shape index: {}]  }
   0x1   :  { %101 = vmatprep.subr.bf16.mxu0 %v113_v0  ;;  %v111_v1 = vld [vmem:[%s148_s1] sm:$0xff]   ;;  %105 = vmatprep.mubr.msk.bf16.mxu0 %vm114_vm0, %v113_v0  ;;  %v112_v2 = vld [vmem:[%s148_s1 + $0x8] sm:$0xff]  }
   0x2   :  { %102 = vmatpush3.bf16.msra.mxu0 %v111_v1  ;;  %v12_v3 = vld [vmem:[%s149_s0] sm:$0xff]  ;;  %v13_v4 = vld [vmem:[%s149_s0 + $0x8] sm:$0xff] }
   0x3   :  { %103 = vmatprep.subr.bf16.mxu0 %v113_v0  ;;  %v14_v5 = vpack.c.bf16 %v13_v4, %v12_v3 }
   0x6   :  { %104 = vmatpush3.bf16.msra.mxu0 %v112_v2 }
   0x9   :  { %106 = vmatmul.mubr.msk.bf16.vlgmr.msra.gmra.mrb[0].mxu0 %vm31_vm1, %v14_v5 }
  0xdc   :  { %v69_v6 = vpop.f32.mrb[0].mxu0 }
  0xdd   :  { %v96_v7 = vpack.c.bf16 %v69_v6, %v69_v6  ;;  %v107_v8 = vpop.f32.mrb[1].mxu0 }
  0xde   :  { %v72_v9 = vpop.f32.mrb[2].mxu0 }
  0xdf   :  { %85 = vst.msk [vmem:[%s150_s2] sm:$0xf] %vm84_vm2, %v96_v7  ;;  %v97_v10 = vpack.c.bf16 %v72_v9, %v72_v9  ;;  %v108_v11 = vpop.f32.mrb[3].mxu0 }
  0xe1   :  { %86 = vst.msk [vmem:[%s150_s2 + $0x4] sm:$0xf] %vm84_vm2, %v97_v10 }

// kernel: reformer_encoder.9
= control target key start
LH: loop header
LB: loop body
LE: loop exit
PB: predicated region body
PF: predicated region fallthrough
CT: control target
= control target key end

     0   :  { %s2289_s24 = smov 0   ;;  %s2291_s25 = smov 0   ;;  %s2656_s0 = inlined_call_operand.vmem [shape: bf16[8,4,4,8], index: 0, kind: input, shape index: {}, may-alias: {0,1}]   ;;  %s2657_s1 = inlined_call_operand.vmem [shape: bf16[8,4,4,8], index: 1, kind: input, shape index: {}, may-alias: {0,1}]   ;;  %s2658_s2 = inlined_call_operand.vmem [shape: bf16[8,4,4,8], index: 2, kind: input, shape index: {}, may-alias: {2,3}]   ;;  %s2659_s3 = inlined_call_operand.vmem [shape: bf16[8,4,4,8], index: 3, kind: input, shape index: {}, may-alias: {2,3}]   ;;  %s2660_s4 = inlined_call_operand.vmem [shape: s32[8,4,4], index: 4, kind: input, shape index: {}]   ;;  %s2661_s5 = inlined_call_operand.vmem [shape: s32[8,4,4], index: 5, kind: input, shape index: {}]   ;;  %s2662_s6 = inlined_call_operand.vmem [shape: bf16[8,4,4,8], index: 6, kind: output, shape index: {0}]   ;;  %s2663_s7 = inlined_call_operand.vmem [shape: f32[8,4,4], index: 7, kind: output, shape index: {1}]  }
   0x1   :  { %s2293_s26 = smov 0  }
   0x2 LB: > { %s30_s27 = sadd.s32 1, %s2240_s25  ;;  %p1975_p0 = scmp.ge.s32.totalorder %s2244_s26, 1  ;;  %s2244_s26 = sphi %s2293_s26, %s18_s26   ;;  %s2240_s25 = sphi %s2291_s25, %s2667_s25   ;;  %s2236_s24 = sphi %s2289_s24, %s2666_s24  }
   0x3   : > { %p32_p1 = scmp.ge.s32.totalorder %s30_s27, 8  ;;  %p450_p2 = scmp.lt.s32.totalorder %s2244_s26, 9 }
   0x5   : > { %s2669_s27 = smov (%p32_p1, %s30_s27), 0  ;;  %p451_p3 = pnand %p1975_p0, %p450_p2 }
   0x6   : > { %p565_p4 = scmp.lt.s32.totalorder (!%p451_p3), %s2236_s24, 7  ;;  %vm708_vm0 = vcmask (!%p451_p3), 60416   ;;  %v2246_v16 = vmov (!%p451_p3), 0.0   ;;  %vm2247_vm1 = vmmov (!%p451_p3), 0   ;;  %v926_v17 = vlaneseq (!%p451_p3) }
   0x7   : > { %454 = sbr.rel (%p451_p3) target bundleno = 1194 (0x4aa), region = 44  ;;  %2049 = vmatprep.subr.bf16.mxu0 (!%p451_p3), %v2246_v16  ;;  %2055 = vmatprep.subr.bf16.mxu1 (!%p451_p3), %v2246_v16  ;;  %vm737_vm2 = vcmask (!%p451_p3), 64512   ;;  %v2248_v52 = vmov (!%p451_p3), 1966171168   ;;  %vm1002_vm6 = vcmask (!%p451_p3), 27648   ;;  %vm1047_vm10 = vcmask (!%p451_p3), 1041408  }
   0x8   : > { %2051 = vmatprep.mubr.msk.bf16.mxu0 (!%p451_p3), %vm2247_vm1, %v2246_v16  ;;  %2057 = vmatprep.mubr.msk.bf16.mxu1 (!%p451_p3), %vm2247_vm1, %v2246_v16  ;;  %v2342_v18 = vshrl.u32 (!%p451_p3), %v926_v17, 7  ;;  %v955_v53 = vunpack.c.l.s4 (!%p451_p3), %v2248_v52  ;;  %vm1043_vm11 = vcmask (!%p451_p3), 31744   ;;  %vm1751_vm14 = vcmask (!%p451_p3), 1041409  }
   0x9   : > { %vm1753_vm15 = vcmask (!%p451_p3), 1042434  }
   0xa   : > { %v2347_v20 = vsub.s32 (!%p451_p3), 0, %v2342_v18  ;;  %v935_v21 = vsub.s32 (!%p451_p3), 1, %v2342_v18  ;;  %v942_v22 = vsub.s32 (!%p451_p3), 2, %v2342_v18  ;;  %v949_v26 = vsub.s32 (!%p451_p3), 3, %v2342_v18 }
   0xb   : > { %v956_v54 = vunpack.c.0.s8 (!%p451_p3), %v955_v53 }
   0xd   : > { %v959_v56 = vsub.s32 (!%p451_p3), %v956_v54, %v2342_v18 }
   0xe   : > { %s2671_s24 = smov (!%p565_p4, %s2236_s24), 7 }
   0xf   : > { %s2307_s28 = sshll.u32 %s2671_s24, 3  ;;  %s2335_s9 = sshll.u32 %s2671_s24, 2 }
  0x10   : > { %s572_s8 = scalar_lea.vmem %s2656_s0, %s2307_s28  ;;  %s662_s12 = scalar_lea.vmem %s2660_s4, %s2335_s9 }
  0x11   : > { %v2313_v0 = vld [vmem:[%s572_s8] sm:$0x3]  ;;  %v2315_v1 = vld [vmem:[%s572_s8 + $0x2] sm:$0x3]  ;;  %v2317_v2 = vld [vmem:[%s572_s8 + $0x4] sm:$0x3]  ;;  %s669_s15 = scalar_lea.vmem %s2661_s5, %s2335_s9  ;;  %s2445_s22 = scalar_lea.vmem %s2658_s2, %s2307_s28 }
  0x12   : > { %v700_v3 = vunpack.c.l.bf16 %v2313_v0  ;;  %v701_v4 = vunpack.c.l.bf16 %v2315_v1  ;;  %v702_v5 = vunpack.c.l.bf16 %v2317_v2  ;;  %v2322_v6 = vld [vmem:[%s572_s8 + $0x6] sm:$0x3]  ;;  %v2344_v19 = vld [vmem:[%s662_s12] sm:$0xf]  ;;  %s2010_s16 = sadd.s32 6, %s2307_s28  ;;  %s686_s10 = scalar_lea.vmem %s2663_s7, %s2335_s9 }
  0x13   : > { %v703_v7 = vunpack.c.l.bf16 %v2322_v6  ;;  %v929_v23 = vrot.slane %v2344_v19, %v2347_v20  ;;  %v936_v24 = vrot.slane %v2344_v19, %v935_v21  ;;  %v943_v25 = vrot.slane %v2344_v19, %v942_v22  ;;  %v2001_v55 = vld.sshfl [vmem:[%s669_s15] sm:$0x33 pattern:$0x75316420]  ;;  %s595_s19 = scalar_lea.vmem %s2657_s1, %s2010_s16  ;;  %s641_s29 = scalar_lea.vmem %s2659_s3, %s2010_s16 }
  0x14   : > { %v704_v8 = vmul.f32 %v700_v3, %v700_v3  ;;  %v705_v9 = vmul.f32 %v701_v4, %v701_v4  ;;  %v706_v10 = vmul.f32 %v702_v5, %v702_v5  ;;  %v950_v27 = vrot.slane %v2344_v19, %v949_v26  ;;  %s678_s12 = scalar_lea.vmem %s2662_s6, %s2307_s28 }
  0x15   : > { %v707_v11 = vmul.f32 %v703_v7, %v703_v7  ;;  %v1412_v57 = vcombine.high %v2001_v55, %v2001_v55  ;;  %v2397_v59 = vrot.slane %v2001_v55, %v959_v56 }
  0x16   : > { %v709_v12 = vsel %vm708_vm0, %v704_v8, 0.0  ;;  %v715_v13 = vsel %vm708_vm0, %v706_v10, 0.0  ;;  %v712_v14 = vsel %vm708_vm0, %v705_v9, 0.0 }
  0x17   : > { %710 = vadd.xlane.f32.xlu0 %v709_v12  ;;  %716 = vadd.xlane.f32.xlu1 %v715_v13  ;;  %v718_v15 = vsel %vm708_vm0, %v707_v11, 0.0  ;;  %v2395_v58 = vrot.slane %v1412_v57, %v959_v56  ;;  %v1427_v63 = vcombine.high %v2397_v59, %v2397_v59  ;;  %v692_v57 = vld [vmem:[%s2445_s22] sm:$0x3] }
  0x19   : > { %v1436_v60 = vrot.slane %v2395_v58, %v2347_v20 }
  0x1b   : > { %713 = vadd.xlane.f32.xlu0 %v712_v14  ;;  %719 = vadd.xlane.f32.xlu1 %v718_v15 }
  0x2c   : > { %938 = vbcast.lane.b32.xlu1 %v936_v24, 256 }
  0x30   : > { %945 = vbcast.lane.b32.xlu1 %v943_v25, 256 }
  0x31   : > { %931 = vbcast.lane.b32.xlu0 %v929_v23, 256 }
  0x34   : > { %952 = vbcast.lane.b32.xlu1 %v950_v27, 256 }
  0xa4   : > { %v711_v28 = vpop.xlane.xlu0 %710  ;;  %v717_v29 = vpop.xlane.xlu1 %716 }
  0xa5   : > { %v721_v30 = vmax.f32 %v711_v28, 1e-24  ;;  %v723_v31 = vmax.f32 %v717_v29, 1e-24 }
  0xa7   : > { %2172 = vrsqrt.f32 %v721_v30 }
  0xa8   : > { %v714_v32 = vpop.xlane.xlu0 %713  ;;  %2174 = vrsqrt.f32 %v723_v31  ;;  %v720_v33 = vpop.xlane.xlu1 %719 }
  0xa9   : > { %v722_v34 = vmax.f32 %v714_v32, 1e-24  ;;  %v724_v35 = vmax.f32 %v720_v33, 1e-24  ;;  %v698_v33 = vld [vmem:[%s595_s19] sm:$0x3] }
  0xab   : > { %2176 = vrsqrt.f32 %v722_v34 }
  0xac   : > { %2178 = vrsqrt.f32 %v724_v35  ;;  %v939_v61 = vpop.permute.xlu1 %938  ;;  %v2416_v11 = vpop.permute.xlu0 %931 }
  0xad   : > { %vm2401_vm3 = vcmp.eq.s32.totalorder %v939_v61, %v1436_v60  ;;  %v2449_v60 = vsel %vm1047_vm10, %v692_v57, 0 }
  0xb1   : > { %v2173_v36 = vpop.eup %2172 }
  0xb2   : > { %v2175_v37 = vpop.eup %2174  ;;  %v729_v38 = vmul.f32 %v2173_v36, %v700_v3  ;;  %v2408_v3 = vrot.slane %v1427_v63, %v2347_v20 }
  0xb3   : > { %v731_v40 = vmul.f32 %v2175_v37, %v702_v5  ;;  %v960_v5 = vrot.slane %v2344_v19, %v959_v56 }
  0xb4   : > { %v733_v39 = vpack.c.bf16 %v729_v38, %v729_v38 }
  0xb5   : > { %v2177_v41 = vpop.eup %2176  ;;  %v735_v46 = vpack.c.bf16 %v731_v40, %v731_v40  ;;  %v961_v8 = vcombine.high %v960_v5, %v960_v5 }
  0xb6   : > { %v2179_v42 = vpop.eup %2178  ;;  %v2358_v43 = vsel %vm737_vm2, %v733_v39, 0  ;;  %v730_v44 = vmul.f32 %v2177_v41, %v701_v4  ;;  %v2410_v4 = vpop.permute.xlu1 %945  ;;  %v2433_v41 = vunpack.c.l.bf16 %v698_v33 }
  0xb7   : > { %2050 = vmatpush3.bf16.xpose.msra.mxu0 %v2358_v43  ;;  %v732_v47 = vmul.f32 %v2179_v42, %v703_v7  ;;  %v2367_v49 = vsel %vm737_vm2, %v735_v46, 0  ;;  %vm1447_vm4 = vcmp.eq.s32.totalorder %v2410_v4, %v2408_v3  ;;  %v968_v7 = vrot.slane %v960_v5, %v959_v56  ;;  %v699_v3 = vld [vmem:[%s641_s29] sm:$0x3] }
  0xb8   : > { %v734_v45 = vpack.c.bf16 %v730_v44, %v730_v44  ;;  %2061 = vmatprep.subr.bf16.mxu0 %v2246_v16  ;;  %v975_v10 = vrot.slane %v961_v8, %v959_v56  ;;  %v1230_v52 = vmul.f32 %v2433_v41, %v2433_v41 }
  0xb9   : > { %v736_v50 = vpack.c.bf16 %v732_v47, %v732_v47  ;;  %v981_v9 = vrot.slane %v968_v7, %v2347_v20  ;;  %v976_v14 = vcombine.high %v968_v7, %v968_v7 }
  0xba   : > { %v2363_v48 = vsel %vm737_vm2, %v734_v45, 0  ;;  %v985_v13 = vrot.slane %v975_v10, %v2347_v20  ;;  %v977_v27 = vcombine.high %v975_v10, %v975_v10  ;;  %v2431_v39 = vpop.permute.xlu1 %952  ;;  %v1231_v56 = vsel %vm708_vm0, %v1230_v52, 0.0 }
  0xbb   : > { %2056 = vmatpush3.bf16.xpose.msra.mxu1 %v2363_v48  ;;  %v880_v51 = vsel %vm737_vm2, %v736_v50, 0  ;;  %vm994_vm5 = vcmp.eq.s32.totalorder %v2416_v11, %v981_v9  ;;  %v989_v26 = vrot.slane %v976_v14, %v2347_v20  ;;  %vm1755_vm0 = vcmask 1043459  }
  0xbc   : > { %2067 = vmatprep.subr.bf16.mxu1 %v2246_v16  ;;  %vm995_vm7 = vcmp.eq.s32.totalorder %v939_v61, %v985_v13  ;;  %v993_v36 = vrot.slane %v977_v27, %v2347_v20  ;;  %v693_v61 = vld [vmem:[%s2445_s22 + $0x2] sm:$0x3] }
  0xbd   : > { %vm996_vm8 = vcmp.eq.s32.totalorder %v2410_v4, %v989_v26  ;;  %v2455_v63 = vsel %vm1047_vm10, %v693_v61, 0  ;;  %v1525_v4 = vsel %vm1047_vm10, %v699_v3, 0 }
  0xbe   : > { %2052 = vmatmul.mubr.msk.bf16.vlgmr.msra.gmra.mrb[0].mxu0 %vm737_vm2, %v2313_v0  ;;  %vm997_vm9 = vcmp.eq.s32.totalorder %v2431_v39, %v993_v36 }
  0xbf   : > { %2062 = vmatpush3.bf16.xpose.msra.mxu0 %v2367_v49  ;;  %2063 = vmatprep.mubr.msk.bf16.mxu0 %vm2247_vm1, %v2246_v16 }
  0xc0   : > { %2073 = vmatprep.subr.bf16.mxu0 %v2246_v16 }
  0xc2   : > { %2058 = vmatmul.mubr.msk.bf16.vlgmr.msra.gmra.mrb[0].mxu1 %vm737_vm2, %v2315_v1 }
  0xc3   : > { %2068 = vmatpush3.bf16.xpose.msra.mxu1 %v880_v51  ;;  %2069 = vmatprep.mubr.msk.bf16.mxu1 %vm2247_vm1, %v2246_v16 }
  0xc4   : > { %2079 = vmatprep.subr.bf16.mxu1 %v2246_v16 }
  0xc6   : > { %2064 = vmatmul.mubr.msk.bf16.vlgmr.msra.gmra.mrb[4].mxu0 %vm737_vm2, %v2317_v2 }
  0xc7   : > { %2075 = vmatprep.mubr.msk.bf16.mxu0 %vm2247_vm1, %v2246_v16  ;;  %2074 = vmatpush3.bf16.msra.mxu0 %v2449_v60 }
  0xc8   : > { %2085 = vmatprep.subr.bf16.mxu0 %v2246_v16 }
  0xca   : > { %2070 = vmatmul.mubr.msk.bf16.vlgmr.msra.gmra.mrb[4].mxu1 %vm737_vm2, %v2322_v6 }
  0xcb   : > { %2081 = vmatprep.mubr.msk.bf16.mxu1 %vm2247_vm1, %v2246_v16  ;;  %2080 = vmatpush3.bf16.msra.mxu1 %v2455_v63 }
  0xcc   : > { %2091 = vmatprep.subr.bf16.mxu1 %v2246_v16 }
 0x191   : > { %v778_v12 = vpop.f32.mrb[0].mxu0 }
 0x192   : > { %v922_v15 = vmul.f32 0.35355338, %v778_v12  ;;  %v2053_v21 = vpop.f32.mrb[1].mxu0 }
 0x193   : > { %v781_v22 = vpop.f32.mrb[2].mxu0 }
 0x194   : > { %v2054_v19 = vpop.f32.mrb[3].mxu0  ;;  %v998_v23 = vsel %vm994_vm5, -50000.0, %v922_v15 }
 0x195   : > { %v824_v24 = vpop.f32.mrb[0].mxu1  ;;  %v1003_v25 = vsel %vm1002_vm6, %v998_v23, -inf  ;;  %v694_v19 = vld [vmem:[%s2445_s22 + $0x4] sm:$0x3] }
 0x196   : > { %v923_v28 = vmul.f32 0.35355338, %v824_v24  ;;  %v2059_v29 = vpop.f32.mrb[1].mxu1  ;;  %1004 = vmax.xlane.f32.xlu0 %v1003_v25  ;;  %v2477_v27 = vsel %vm1047_vm10, %v694_v19, 0 }
 0x197   : > { %v827_v30 = vpop.f32.mrb[2].mxu1  ;;  %v695_v29 = vld [vmem:[%s2445_s22 + $0x6] sm:$0x3] }
 0x198   : > { %v2060_v31 = vpop.f32.mrb[3].mxu1  ;;  %v999_v32 = vsel %vm995_vm7, -50000.0, %v923_v28 }
 0x199   : > { %v870_v34 = vpop.f32.mrb[4].mxu0  ;;  %v1006_v35 = vsel %vm1002_vm6, %v999_v32, -inf }
 0x19a   : > { %v924_v37 = vmul.f32 0.35355338, %v870_v34  ;;  %v2065_v38 = vpop.f32.mrb[5].mxu0  ;;  %1007 = vmax.xlane.f32.xlu1 %v1006_v35 }
 0x19b   : > { %v873_v40 = vpop.f32.mrb[6].mxu0 }
 0x19c   : > { %v2066_v42 = vpop.f32.mrb[7].mxu0  ;;  %v1000_v44 = vsel %vm996_vm8, -50000.0, %v924_v37 }
 0x19d   : > { %v916_v45 = vpop.f32.mrb[4].mxu1  ;;  %v1009_v46 = vsel %vm1002_vm6, %v1000_v44, -inf }
 0x19e   : > { %v925_v47 = vmul.f32 0.35355338, %v916_v45  ;;  %v2071_v50 = vpop.f32.mrb[5].mxu1  ;;  %1010 = vmax.xlane.f32.xlu0 %v1009_v46 }
 0x19f   : > { %v919_v51 = vpop.f32.mrb[6].mxu1 }
 0x1a0   : > { %v2072_v53 = vpop.f32.mrb[7].mxu1  ;;  %v1001_v54 = vsel %vm997_vm9, -50000.0, %v925_v47 }
 0x1a1   : > { %v1012_v55 = vsel %vm1002_vm6, %v1001_v54, -inf }
 0x1a2   : > { %1013 = vmax.xlane.f32.xlu0 %v1012_v55  ;;  %v1432_v55 = vrot.slane %v2397_v59, %v2347_v20 }
 0x1a4   : > { %vm1445_vm12 = vcmp.eq.s32.totalorder %v2416_v11, %v1432_v55 }
 0x1a6   : > { %1232 = vadd.xlane.f32.xlu0 %v1231_v56 }
 0x223   : > { %v2459_v5 = vpop.xlane.xlu0 %1004 }
 0x224   : > { %v1015_v7 = vsub.f32 %v998_v23, %v2459_v5 }
 0x226   : > { %v1019_v8 = vmul.f32 1.442695, %v1015_v7 }
 0x227   : > { %v2462_v9 = vpop.xlane.xlu1 %1007 }
 0x228   : > { %2180 = vpow2.f32 %v1019_v8  ;;  %v1016_v10 = vsub.f32 %v999_v32, %v2462_v9  ;;  %v1187_v32 = vsel %vm1047_vm10, %v695_v29, 0 }
 0x22a   : > { %v1021_v12 = vmul.f32 1.442695, %v1016_v10 }
 0x22b   : > { %v2465_v13 = vpop.xlane.xlu0 %1010 }
 0x22c   : > { %2182 = vpow2.f32 %v1021_v12  ;;  %v1017_v14 = vsub.f32 %v1000_v44, %v2465_v13 }
 0x22e   : > { %v1023_v15 = vmul.f32 1.442695, %v1017_v14 }
 0x22f   : > { %v2468_v21 = vpop.xlane.xlu0 %1013 }
 0x230   : > { %2184 = vpow2.f32 %v1023_v15  ;;  %v1018_v22 = vsub.f32 %v1001_v54, %v2468_v21 }
 0x232   : > { %v2472_v23 = vpop.eup %2180  ;;  %v1025_v24 = vmul.f32 1.442695, %v1018_v22 }
 0x233   : > { %v1233_v25 = vpop.xlane.xlu0 %1232  ;;  %v1039_v26 = vpack.c.bf16 %v2472_v23, %v2472_v23 }
 0x234   : > { %2186 = vpow2.f32 %v1025_v24  ;;  %v1234_v28 = vmax.f32 %v1233_v25, 1e-24 }
 0x235   : > { %2076 = vmatmul.mubr.msk.bf16.vlgmr.msra.gmra.mrb[8].mxu0 %vm1043_vm11, %v1039_v26 }
 0x236   : > { %v2481_v30 = vpop.eup %2182  ;;  %2188 = vrsqrt.f32 %v1234_v28  ;;  %2086 = vmatpush3.bf16.msra.mxu0 %v2477_v27  ;;  %2087 = vmatprep.mubr.msk.bf16.mxu0 %vm2247_vm1, %v2246_v16 }
 0x237   : > { %v1040_v31 = vpack.c.bf16 %v2481_v30, %v2481_v30  ;;  %2097 = vmatprep.subr.bf16.mxu0 %v2246_v16 }
 0x239   : > { %2082 = vmatmul.mubr.msk.bf16.vlgmr.msra.gmra.mrb[8].mxu1 %vm1043_vm11, %v1040_v31 }
 0x23a   : > { %v2491_v33 = vpop.eup %2184  ;;  %2092 = vmatpush3.bf16.msra.mxu1 %v1187_v32  ;;  %2093 = vmatprep.mubr.msk.bf16.mxu1 %vm2247_vm1, %v2246_v16 }
 0x23b   : > { %v1041_v34 = vpack.c.bf16 %v2491_v33, %v2491_v33  ;;  %2103 = vmatprep.subr.bf16.mxu1 %v2246_v16 }
 0x23d   : > { %2088 = vmatmul.mubr.msk.bf16.vlgmr.msra.gmra.mrb[12].mxu0 %vm1043_vm11, %v1041_v34 }
 0x23e   : > { %v2499_v35 = vpop.eup %2186  ;;  %2099 = vmatprep.mubr.msk.bf16.mxu0 %vm2247_vm1, %v2246_v16 }
 0x23f   : > { %v1042_v36 = vpack.c.bf16 %v2499_v35, %v2499_v35 }
 0x240   : > { %v2189_v37 = vpop.eup %2188 }
 0x241   : > { %2094 = vmatmul.mubr.msk.bf16.vlgmr.msra.gmra.mrb[12].mxu1 %vm1043_vm11, %v1042_v36  ;;  %v1236_v38 = vmul.f32 %v2189_v37, %v2433_v41 }
 0x242   : > { %2105 = vmatprep.mubr.msk.bf16.mxu1 %vm2247_vm1, %v2246_v16 }
 0x243   : > { %2104 = vmatpush3.bf16.xpose.msra.mxu1 %v2358_v43  ;;  %v1237_v40 = vpack.c.bf16 %v1236_v38, %v1236_v38 }
 0x244   : > { %2115 = vmatprep.subr.bf16.mxu1 %v2246_v16 }
 0x245   : > { %v1239_v42 = vsel %vm737_vm2, %v1237_v40, 0 }
 0x246   : > { %2098 = vmatpush3.bf16.xpose.msra.mxu0 %v1239_v42  ;;  %v1027_v42 = vsel %vm1002_vm6, %v2472_v23, 0.0 }
 0x247   : > { %2109 = vmatprep.subr.bf16.mxu0 %v2246_v16 }
 0x24a   : > { %2106 = vmatmul.mubr.msk.bf16.vlgmr.msra.gmra.mrb[16].mxu1 %vm737_vm2, %v2315_v1 }
 0x24b   : > { %2116 = vmatpush3.bf16.xpose.msra.mxu1 %v2367_v49  ;;  %2117 = vmatprep.mubr.msk.bf16.mxu1 %vm2247_vm1, %v2246_v16 }
 0x24c   : > { %2127 = vmatprep.subr.bf16.mxu1 %v2246_v16 }
 0x24d   : > { %2100 = vmatmul.mubr.msk.bf16.vlgmr.msra.gmra.mrb[16].mxu0 %vm737_vm2, %v2313_v0 }
 0x24e   : > { %2110 = vmatpush3.bf16.xpose.msra.mxu0 %v2363_v48  ;;  %2111 = vmatprep.mubr.msk.bf16.mxu0 %vm2247_vm1, %v2246_v16 }
 0x24f   : > { %2121 = vmatprep.subr.bf16.mxu0 %v2246_v16 }
 0x252   : > { %2118 = vmatmul.mubr.msk.bf16.vlgmr.msra.gmra.mrb[20].mxu1 %vm737_vm2, %v2322_v6 }
 0x253   : > { %2128 = vmatpush3.bf16.msra.mxu1 %v2449_v60  ;;  %2129 = vmatprep.mubr.msk.bf16.mxu1 %vm2247_vm1, %v2246_v16  ;;  %v1428_v60 = vcombine.high %v2395_v58, %v2395_v58 }
 0x254   : > { %2139 = vmatprep.subr.bf16.mxu1 %v2246_v16 }
 0x255   : > { %2112 = vmatmul.mubr.msk.bf16.vlgmr.msra.gmra.mrb[20].mxu0 %vm737_vm2, %v2317_v2  ;;  %v1444_v59 = vrot.slane %v1428_v60, %v2347_v20 }
 0x256   : > { %2123 = vmatprep.mubr.msk.bf16.mxu0 %vm2247_vm1, %v2246_v16  ;;  %2122 = vmatpush3.bf16.msra.mxu0 %v1525_v4 }
 0x257   : > { %vm1448_vm13 = vcmp.eq.s32.totalorder %v2431_v39, %v1444_v59  ;;  %v1030_v39 = vsel %vm1002_vm6, %v2481_v30, 0.0  ;;  %2133 = vmatprep.subr.bf16.mxu0 %v2246_v16 }
 0x308   : > { %v2535_v0 = vpop.f32.mrb[8].mxu0 }
 0x309   : > { %v2077_v1 = vpop.f32.mrb[9].mxu0 }
 0x30a   : > { %v1088_v43 = vpop.f32.mrb[10].mxu0  ;;  %v1036_v1 = vsel %vm1002_vm6, %v2499_v35, 0.0 }
 0x30b   : > { %v2078_v48 = vpop.f32.mrb[11].mxu0  ;;  %v1033_v43 = vsel %vm1002_vm6, %v2491_v33, 0.0 }
 0x30c   : > { %v2537_v49 = vpop.f32.mrb[8].mxu1 }
 0x30d   : > { %v2083_v6 = vpop.f32.mrb[9].mxu1 }
 0x30e   : > { %v1134_v41 = vpop.f32.mrb[10].mxu1 }
 0x30f   : > { %v2084_v44 = vpop.f32.mrb[11].mxu1 }
 0x310   : > { %v2539_v45 = vpop.f32.mrb[12].mxu0 }
 0x311   : > { %v2089_v46 = vpop.f32.mrb[13].mxu0 }
 0x312   : > { %v1180_v47 = vpop.f32.mrb[14].mxu0 }
 0x313   : > { %v2090_v50 = vpop.f32.mrb[15].mxu0 }
 0x314   : > { %v2541_v51 = vpop.f32.mrb[12].mxu1 }
 0x315   : > { %v2095_v2 = vpop.f32.mrb[13].mxu1 }
 0x316   : > { %v1226_v52 = vpop.f32.mrb[14].mxu1 }
 0x317   : > { %v2096_v53 = vpop.f32.mrb[15].mxu1 }
 0x31d   : > { %v1315_v54 = vpop.f32.mrb[16].mxu1 }
 0x31e   : > { %v1402_v56 = vmul.f32 0.35355338, %v1315_v54  ;;  %v2107_v57 = vpop.f32.mrb[17].mxu1 }
 0x31f   : > { %v1318_v61 = vpop.f32.mrb[18].mxu1 }
 0x320   : > { %v1275_v7 = vpop.f32.mrb[16].mxu0  ;;  %v1450_v8 = vsel %vm2401_vm3, -50000.0, %v1402_v56  ;;  %v2108_v10 = vpop.f32.mrb[19].mxu1 }
 0x321   : > { %v1401_v12 = vmul.f32 0.35355338, %v1275_v7  ;;  %v1456_v14 = vsel %vm1002_vm6, %v1450_v8, -inf  ;;  %v2101_v15 = vpop.f32.mrb[17].mxu0 }
 0x322   : > { %1457 = vmax.xlane.f32.xlu0 %v1456_v14  ;;  %v1278_v22 = vpop.f32.mrb[18].mxu0 }
 0x323   : > { %v2102_v19 = vpop.f32.mrb[19].mxu0  ;;  %v1449_v24 = vsel %vm1445_vm12, -50000.0, %v1401_v12 }
 0x324   : > { %v1453_v58 = vsel %vm1002_vm6, %v1449_v24, -inf }
 0x325   : > { %v1395_v25 = vpop.f32.mrb[20].mxu1  ;;  %1454 = vmax.xlane.f32.xlu1 %v1453_v58 }
 0x326   : > { %v1404_v26 = vmul.f32 0.35355338, %v1395_v25  ;;  %v2119_v62 = vpop.f32.mrb[21].mxu1 }
 0x327   : > { %v1398_v28 = vpop.f32.mrb[22].mxu1 }
 0x328   : > { %v1355_v29 = vpop.f32.mrb[20].mxu0  ;;  %v1452_v31 = vsel %vm1448_vm13, -50000.0, %v1404_v26  ;;  %v2120_v32 = vpop.f32.mrb[23].mxu1 }
 0x329   : > { %v1403_v34 = vmul.f32 0.35355338, %v1355_v29  ;;  %v1462_v11 = vsel %vm1002_vm6, %v1452_v31, -inf  ;;  %v2113_v36 = vpop.f32.mrb[21].mxu0 }
 0x32a   : > { %1463 = vmax.xlane.f32.xlu0 %v1462_v11  ;;  %v1358_v20 = vpop.f32.mrb[22].mxu0 }
 0x32b   : > { %v2114_v37 = vpop.f32.mrb[23].mxu0  ;;  %v1451_v38 = vsel %vm1447_vm4, -50000.0, %v1403_v34 }
 0x32c   : > { %v1459_v40 = vsel %vm1002_vm6, %v1451_v38, -inf }
 0x32d   : > { %1460 = vmax.xlane.f32.xlu1 %v1459_v40 }
 0x32e   : > { %1031 = vadd.xlane.f32.xlu0 %v1030_v39 }
 0x331   : > { %1028 = vadd.xlane.f32.xlu1 %v1027_v42 }
 0x332   : > { %1037 = vadd.xlane.f32.xlu0 %v1036_v1 }
 0x335   : > { %1034 = vadd.xlane.f32.xlu1 %v1033_v43 }
 0x3af   : > { %v1458_v23 = vpop.xlane.xlu0 %1457 }
 0x3b0   : > { %v2575_v30 = vmax.f32 %v2462_v9, %v1458_v23 }
 0x3b2   : > { %v1470_v35 = vsub.f32 %v2462_v9, %v2575_v30  ;;  %v1482_v33 = vsub.f32 %v1450_v8, %v2575_v30  ;;  %v1455_v48 = vpop.xlane.xlu1 %1454 }
 0x3b3   : > { %v2581_v6 = vmax.f32 %v2459_v5, %v1455_v48 }
 0x3b4   : > { %v1475_v41 = vmul.f32 1.442695, %v1470_v35  ;;  %v1487_v44 = vmul.f32 1.442695, %v1482_v33  ;;  %v1734_v35 = vand.u32 127, %v926_v17 }
 0x3b5   : > { %v1469_v46 = vsub.f32 %v2459_v5, %v2581_v6  ;;  %v1481_v47 = vsub.f32 %v1449_v24, %v2581_v6 }
 0x3b6   : > { %2190 = vpow2.f32 %v1475_v41 }
 0x3b7   : > { %2192 = vpow2.f32 %v1487_v44  ;;  %v1473_v50 = vmul.f32 1.442695, %v1469_v46  ;;  %v1485_v2 = vmul.f32 1.442695, %v1481_v47  ;;  %v1464_v52 = vpop.xlane.xlu0 %1463  ;;  %v1737_v47 = vsub.s32 %v1734_v35, %v2342_v18 }
 0x3b8   : > { %v2587_v9 = vmax.f32 %v2468_v21, %v1464_v52 }
 0x3b9   : > { %2194 = vpow2.f32 %v1473_v50 }
 0x3ba   : > { %2196 = vpow2.f32 %v1485_v2  ;;  %v1472_v53 = vsub.f32 %v2468_v21, %v2587_v9  ;;  %v1484_v54 = vsub.f32 %v1452_v31, %v2587_v9  ;;  %v1461_v55 = vpop.xlane.xlu1 %1460 }
 0x3bb   : > { %v2593_v5 = vmax.f32 %v2465_v13, %v1461_v55 }
 0x3bc   : > { %v1479_v56 = vmul.f32 1.442695, %v1472_v53  ;;  %v1491_v57 = vmul.f32 1.442695, %v1484_v54 }
 0x3bd   : > { %v1471_v60 = vsub.f32 %v2465_v13, %v2593_v5  ;;  %v1483_v61 = vsub.f32 %v1451_v38, %v2593_v5 }
 0x3be   : > { %2198 = vpow2.f32 %v1479_v56 }
 0x3bf   : > { %2200 = vpow2.f32 %v1491_v57  ;;  %v1477_v7 = vmul.f32 1.442695, %v1471_v60  ;;  %v1489_v8 = vmul.f32 1.442695, %v1483_v61 }
 0x3c0   : > { %v2191_v10 = vpop.eup %2190 }
 0x3c1   : > { %v2193_v12 = vpop.eup %2192  ;;  %2202 = vpow2.f32 %v1477_v7  ;;  %v2599_v21 = vmul.f32 %v2191_v10, %v2537_v49 }
 0x3c2   : > { %2204 = vpow2.f32 %v1489_v8  ;;  %v1500_v14 = vsel %vm1002_vm6, %v2193_v12, 0.0  ;;  %v1518_v15 = vpack.c.bf16 %v2193_v12, %v2193_v12 }
 0x3c3   : > { %v2195_v22 = vpop.eup %2194  ;;  %1501 = vadd.xlane.f32.xlu0 %v1500_v14 }
 0x3c4   : > { %v2197_v59 = vpop.eup %2196  ;;  %2130 = vmatmul.mubr.msk.bf16.vlgmr.msra.gmra.mrb[24].mxu1 %vm1043_vm11, %v1518_v15  ;;  %v2604_v13 = vmul.f32 %v2195_v22, %v2535_v0 }
 0x3c5   : > { %v1497_v19 = vsel %vm1002_vm6, %v2197_v59, 0.0  ;;  %v1517_v24 = vpack.c.bf16 %v2197_v59, %v2197_v59  ;;  %2140 = vmatpush3.bf16.msra.mxu1 %v2477_v27  ;;  %2141 = vmatprep.mubr.msk.bf16.mxu1 %vm2247_vm1, %v2246_v16 }
 0x3c6   : > { %1498 = vadd.xlane.f32.xlu1 %v1497_v19 }
 0x3c7   : > { %2124 = vmatmul.mubr.msk.bf16.vlgmr.msra.gmra.mrb[24].mxu0 %vm1043_vm11, %v1517_v24 }
 0x3c8   : > { %v2199_v49 = vpop.eup %2198  ;;  %2134 = vmatpush3.bf16.msra.mxu0 %v2455_v63  ;;  %2135 = vmatprep.mubr.msk.bf16.mxu0 %vm2247_vm1, %v2246_v16  ;;  %v1032_v16 = vpop.xlane.xlu0 %1031  ;;  %vm1712_vm1 = vcmask 58368  }
 0x3c9   : > { %v2201_v58 = vpop.eup %2200  ;;  %v2615_v0 = vmul.f32 %v2199_v49, %v2541_v51  ;;  %v1029_v51 = vpop.xlane.xlu1 %1028  ;;  %v1494_v11 = vmul.f32 %v2191_v10, %v1032_v16 }
 0x3ca   : > { %v1506_v25 = vsel %vm1002_vm6, %v2201_v58, 0.0  ;;  %v1520_v26 = vpack.c.bf16 %v2201_v58, %v2201_v58  ;;  %v1493_v36 = vmul.f32 %v2195_v22, %v1029_v51 }
 0x3cb   : > { %v2203_v27 = vpop.eup %2202  ;;  %1507 = vadd.xlane.f32.xlu0 %v1506_v25 }
 0x3cc   : > { %v2205_v62 = vpop.eup %2204  ;;  %2142 = vmatmul.mubr.msk.bf16.vlgmr.msra.gmra.mrb[28].mxu1 %vm1043_vm11, %v1520_v26  ;;  %v2620_v28 = vmul.f32 %v2203_v27, %v2539_v45  ;;  %v1038_v31 = vpop.xlane.xlu0 %1037 }
 0x3cd   : > { %v1503_v63 = vsel %vm1002_vm6, %v2205_v62, 0.0  ;;  %v1519_v29 = vpack.c.bf16 %v2205_v62, %v2205_v62  ;;  %v1035_v32 = vpop.xlane.xlu1 %1034  ;;  %v1496_v40 = vmul.f32 %v2199_v49, %v1038_v31 }
 0x3ce   : > { %1504 = vadd.xlane.f32.xlu1 %v1503_v63  ;;  %v1495_v42 = vmul.f32 %v2203_v27, %v1035_v32 }
 0x3cf   : > { %2136 = vmatmul.mubr.msk.bf16.vlgmr.msra.gmra.mrb[28].mxu0 %vm1043_vm11, %v1519_v29 }
 0x450   : > { %v1502_v34 = vpop.xlane.xlu0 %1501 }
 0x451   : > { %v1510_v37 = vadd.f32 %v1502_v34, %v1494_v11 }
 0x453   : > { %v1499_v20 = vpop.xlane.xlu1 %1498 }
 0x454   : > { %v1509_v38 = vadd.f32 %v1499_v20, %v1493_v36 }
 0x456   : > { %2206 = vlog2.f32 %v1509_v38 }
 0x457   : > { %2208 = vlog2.f32 %v1510_v37 }
 0x458   : > { %v1508_v45 = vpop.xlane.xlu0 %1507 }
 0x459   : > { %v1512_v39 = vadd.f32 %v1508_v45, %v1496_v40 }
 0x45b   : > { %v1505_v1 = vpop.xlane.xlu1 %1504  ;;  %2210 = vlog2.f32 %v1512_v39 }
 0x45c   : > { %v1511_v43 = vadd.f32 %v1505_v1, %v1495_v42 }
 0x45e   : > { %2212 = vlog2.f32 %v1511_v43 }
 0x45f   : > { %2214 = vrcp.f32 %v1510_v37 }
 0x460   : > { %v2207_v3 = vpop.eup %2206  ;;  %2216 = vrcp.f32 %v1509_v38 }
 0x461   : > { %v2209_v4 = vpop.eup %2208  ;;  %v1718_v23 = vmul.f32 0.6931472, %v2207_v3  ;;  %2218 = vrcp.f32 %v1512_v39 }
 0x462   : > { %v1720_v33 = vmul.f32 0.6931472, %v2209_v4  ;;  %2220 = vrcp.f32 %v1511_v43 }
 0x463   : > { %v1725_v41 = vadd.f32 %v1718_v23, %v2581_v6 }
 0x464   : > { %v1726_v50 = vadd.f32 %v1720_v33, %v2575_v30 }
 0x465   : > { %v2211_v48 = vpop.eup %2210  ;;  %v1738_v52 = vrot.slane %v1725_v41, %v1737_v47 }
 0x466   : > { %v1724_v44 = vmul.f32 0.6931472, %v2211_v48  ;;  %v1742_v55 = vrot.slane %v1726_v50, %v1737_v47 }
 0x468   : > { %v2213_v46 = vpop.eup %2212  ;;  %v1728_v53 = vadd.f32 %v1724_v44, %v2587_v9  ;;  %v1752_v6 = vsel %vm1751_vm14, %v1742_v55, %v1738_v52 }
 0x469   : > { %v1722_v2 = vmul.f32 0.6931472, %v2213_v46  ;;  %v2215_v60 = vpop.eup %2214 }
 0x46a   : > { %v1750_v56 = vrot.slane %v1728_v53, %v1737_v47  ;;  %v2217_v15 = vpop.eup %2216 }
 0x46b   : > { %v1727_v54 = vadd.f32 %v1722_v2, %v2593_v5  ;;  %v2219_v26 = vpop.eup %2218 }
 0x46c   : > { %v2221_v51 = vpop.eup %2220 }
 0x46d   : > { %v1746_v17 = vrot.slane %v1727_v54, %v1737_v47 }
 0x46f   : > { %v1754_v18 = vsel %vm1753_vm15, %v1746_v17, %v1752_v6 }
 0x470   : > { %v1756_v30 = vsel %vm1755_vm0, %v1750_v56, %v1754_v18 }
 0x471   : > { %1758 = vst.msk [vmem:[%s686_s10] sm:$0xf] %vm1002_vm6, %v1756_v30 }
 0x497   : > { %v1604_v9 = vpop.f32.mrb[24].mxu1 }
 0x498   : > { %v1697_v5 = vadd.f32 %v1604_v9, %v2599_v21  ;;  %v2131_v57 = vpop.f32.mrb[25].mxu1 }
 0x499   : > { %v1607_v61 = vpop.f32.mrb[26].mxu1 }
 0x49a   : > { %v1705_v7 = vmul.f32 %v2215_v60, %v1697_v5  ;;  %v2132_v8 = vpop.f32.mrb[27].mxu1  ;;  %v1561_v10 = vpop.f32.mrb[24].mxu0 }
 0x49b   : > { %v1696_v12 = vadd.f32 %v1561_v10, %v2604_v13  ;;  %v2125_v14 = vpop.f32.mrb[25].mxu0 }
 0x49c   : > { %v1709_v22 = vpack.c.bf16 %v1705_v7, %v1705_v7  ;;  %v1564_v59 = vpop.f32.mrb[26].mxu0 }
 0x49d   : > { %v1704_v19 = vmul.f32 %v2217_v15, %v1696_v12  ;;  %v2126_v21 = vpop.f32.mrb[27].mxu0 }
 0x49e   : > { %1714 = vst.msk [vmem:[%s678_s12 + $0x2] sm:$0x3] %vm1712_vm1, %v1709_v22 }
 0x49f   : > { %v1708_v24 = vpack.c.bf16 %v1704_v19, %v1704_v19  ;;  %v1690_v49 = vpop.f32.mrb[28].mxu1 }
 0x4a0   : > { %v1699_v58 = vadd.f32 %v1690_v49, %v2615_v0  ;;  %v2143_v25 = vpop.f32.mrb[29].mxu1 }
 0x4a1   : > { %1713 = vst.msk [vmem:[%s678_s12] sm:$0x3] %vm1712_vm1, %v1708_v24  ;;  %v1693_v27 = vpop.f32.mrb[30].mxu1 }
 0x4a2   : > { %v1707_v62 = vmul.f32 %v2219_v26, %v1699_v58  ;;  %v2144_v63 = vpop.f32.mrb[31].mxu1  ;;  %v1647_v13 = vpop.f32.mrb[28].mxu0 }
 0x4a3   : > { %v1698_v29 = vadd.f32 %v1647_v13, %v2620_v28  ;;  %v2137_v16 = vpop.f32.mrb[29].mxu0 }
 0x4a4   : > { %v1711_v31 = vpack.c.bf16 %v1707_v62, %v1707_v62  ;;  %v1650_v32 = vpop.f32.mrb[30].mxu0 }
 0x4a5   : > { %v1706_v34 = vmul.f32 %v2221_v51, %v1698_v29  ;;  %v2138_v11 = vpop.f32.mrb[31].mxu0 }
 0x4a6   : > { %1716 = vst.msk [vmem:[%s678_s12 + $0x6] sm:$0x3] %vm1712_vm1, %v1711_v31 }
 0x4a7   : > { %v1710_v36 = vpack.c.bf16 %v1706_v34, %v1706_v34 }
 0x4a9   : > { %1715 = vst.msk [vmem:[%s678_s12 + $0x4] sm:$0x3] %vm1712_vm1, %v1710_v36 }
 0x4aa PF: > { %s18_s26 = sadd.s32 1, %s2244_s26   ;;  %s2666_s24 = smov %s2240_s25 }
 0x4ab   : > { %p15_p5 = scmp.ge.s32.totalorder %s18_s26, 10   ;;  %s2667_s25 = smov %s2669_s27 }
 0x4ad   :  { %17 = sbr.rel (!%p15_p5) target bundleno = 2 (0x2), region = 101 }

// kernel: reformer_encoder.10
= control target key start
LH: loop header
LB: loop body
LE: loop exit
PB: predicated region body
PF: predicated region fallthrough
CT: control target
= control target key end

     0   :  { %s424_s9 = smov 0   ;;  %s426_s10 = smov 0   ;;  %s465_s0 = inlined_call_operand.vmem [shape: bf16[8,2,8,8], index: 0, kind: input, shape index: {}]   ;;  %s466_s1 = inlined_call_operand.vmem [shape: f32[8,2,8], index: 1, kind: input, shape index: {}]   ;;  %s467_s2 = inlined_call_operand.vmem [shape: bf16[8,8,8], index: 2, kind: output, shape index: {}]  }
   0x1   :  { %s428_s11 = smov 0  }
   0x2 LB: > { %s24_s12 = sadd.s32 1, %s403_s10  ;;  %p345_p0 = scmp.ge.s32.totalorder %s407_s11, 1  ;;  %s407_s11 = sphi %s428_s11, %s12_s11   ;;  %s403_s10 = sphi %s426_s10, %s469_s10   ;;  %s399_s9 = sphi %s424_s9, %s468_s9  }
   0x3   : > { %p26_p1 = scmp.ge.s32.totalorder %s24_s12, 8  ;;  %p145_p2 = scmp.lt.s32.totalorder %s407_s11, 9 }
   0x5   : > { %s471_s12 = smov (%p26_p1, %s24_s12), 0  ;;  %p146_p3 = pnand %p345_p0, %p145_p2 }
   0x6   : > { %p179_p4 = scmp.lt.s32.totalorder (!%p146_p3), %s399_s9, 7  ;;  %vm206_vm0 = vcmask (!%p146_p3), 58368   ;;  %v226_v18 = vlaneseq (!%p146_p3)  ;;  %vm242_vm1 = vcmask (!%p146_p3), 64512   ;;  %vm247_vm2 = vcmask (!%p146_p3), 60416  }
   0x7   : > { %149 = sbr.rel (%p146_p3) target bundleno = 201 (0xc9), region = 28 }
   0x8   : > { %v227_v19 = vshrl.u32 (!%p146_p3), %v226_v18, 7 }
   0xa   : > { %v228_v20 = vsub.s32 (!%p146_p3), 0, %v227_v19  ;;  %v235_v23 = vsub.s32 (!%p146_p3), 1, %v227_v19 }
   0xe   : > { %s473_s9 = smov (!%p179_p4, %s399_s9), 7 }
   0xf   : > { %s348_s13 = sshll.u32 %s473_s9, 1  ;;  %s352_s17 = sshll.u32 %s473_s9, 3 }
  0x10   : > { %s193_s16 = scalar_lea.vmem %s466_s1, %s348_s13  ;;  %s186_s20 = scalar_lea.vmem %s465_s0, %s352_s17 }
  0x11   : > { %v205_v0 = vld [vmem:[%s193_s16] sm:$0x3]  ;;  %s349_s21 = sshll.u32 %s473_s9, 2 }
  0x12   : > { %v207_v1 = vsel %vm206_vm0, %v205_v0, -inf  ;;  %v354_v26 = vld [vmem:[%s186_s20] sm:$0xff]   ;;  %s200_s24 = scalar_lea.vmem %s467_s2, %s349_s21 }
  0x13   : > { %v208_v2 = vrot.slane %v207_v1, 4  ;;  %v355_v27 = vunpack.c.l.bf16 %v354_v26  ;;  %v356_v29 = vunpack.c.h.bf16 %v354_v26 }
  0x15   : > { %v209_v3 = vmax.f32 %v207_v1, %v208_v2 }
  0x17   : > { %v210_v4 = vrot.slane %v209_v3, 2 }
  0x19   : > { %v211_v5 = vmax.f32 %v209_v3, %v210_v4 }
  0x1b   : > { %v212_v6 = vrot.slane %v211_v5, 1 }
  0x1d   : > { %v213_v7 = vmax.f32 %v211_v5, %v212_v6 }
  0x1f   : > { %v214_v8 = vsub.f32 %v205_v0, %v213_v7 }
  0x21   : > { %v215_v9 = vmul.f32 1.442695, %v214_v8 }
  0x23   : > { %381 = vpow2.f32 %v215_v9 }
  0x2d   : > { %v382_v10 = vpop.eup %381 }
  0x2e   : > { %v217_v11 = vsel %vm206_vm0, %v382_v10, 0.0 }
  0x2f   : > { %v218_v12 = vrot.slane %v217_v11, 4 }
  0x31   : > { %v219_v13 = vadd.f32 %v218_v12, %v217_v11 }
  0x33   : > { %v220_v14 = vrot.slane %v219_v13, 2 }
  0x35   : > { %v221_v15 = vadd.f32 %v220_v14, %v219_v13 }
  0x37   : > { %v222_v16 = vrot.slane %v221_v15, 1 }
  0x39   : > { %v223_v17 = vadd.f32 %v222_v16, %v221_v15 }
  0x3b   : > { %383 = vrcp.f32 %v223_v17 }
  0x45   : > { %v384_v21 = vpop.eup %383 }
  0x46   : > { %v225_v22 = vmul.f32 %v384_v21, %v382_v10 }
  0x48   : > { %v229_v24 = vrot.slane %v225_v22, %v228_v20  ;;  %v236_v25 = vrot.slane %v225_v22, %v235_v23 }
  0x4a   : > { %231 = vbcast.lane.b32.xlu0 %v229_v24, 256 }
  0x4e   : > { %238 = vbcast.lane.b32.xlu0 %v236_v25, 256 }
  0xbc   : > { %v232_v28 = vpop.permute.xlu0 %231 }
  0xbd   : > { %v240_v30 = vmul.f32 %v355_v27, %v232_v28 }
  0xbf   : > { %v243_v33 = vsel %vm242_vm1, %v240_v30, 0.0 }
  0xc0   : > { %v239_v31 = vpop.permute.xlu0 %238 }
  0xc1   : > { %v241_v32 = vmul.f32 %v356_v29, %v239_v31 }
  0xc3   : > { %v244_v34 = vsel %vm242_vm1, %v241_v32, 0.0 }
  0xc4   : > { %v245_v35 = vadd.f32 %v244_v34, %v243_v33 }
  0xc6   : > { %v246_v36 = vpack.c.bf16 %v245_v35, %v245_v35 }
  0xc8   : > { %248 = vst.msk [vmem:[%s200_s24] sm:$0xf] %vm247_vm2, %v246_v36 }
  0xc9 PF: > { %s12_s11 = sadd.s32 1, %s407_s11   ;;  %s468_s9 = smov %s403_s10 }
  0xca   : > { %p9_p5 = scmp.ge.s32.totalorder %s12_s11, 10   ;;  %s469_s10 = smov %s471_s12 }
  0xcc   :  { %11 = sbr.rel (!%p9_p5) target bundleno = 2 (0x2), region = 61 }

// kernel: reformer_encoder.15
= control target key start
LH: loop header
LB: loop body
LE: loop exit
PB: predicated region body
PF: predicated region fallthrough
CT: control target
= control target key end

     0   :  { %v490_v1 = vmov 0.0   ;;  %vm491_vm0 = vmmov 0   ;;  %vm75_vm1 = vcmask 261120   ;;  %s649_s0 = inlined_call_operand.vmem [shape: bf16[16,32], index: 0, kind: input, shape index: {}]   ;;  %s650_s1 = inlined_call_operand.vmem [shape: f32[16,32], index: 1, kind: input, shape index: {}]   ;;  %s651_s2 = inlined_call_operand.vmem [shape: bf16[32,32], index: 2, kind: input, shape index: {}]   ;;  %s652_s3 = inlined_call_operand.vmem [shape: f32[1,32], index: 3, kind: input, shape index: {}]   ;;  %s653_s4 = inlined_call_operand.vmem [shape: f32[1,32], index: 4, kind: input, shape index: {}]   ;;  %s654_s5 = inlined_call_operand.vmem [shape: f32[1,32], index: 5, kind: input, shape index: {}]   ;;  %s655_s6 = inlined_call_operand.vmem [shape: bf16[32,64], index: 6, kind: input, shape index: {}]   ;;  %s656_s7 = inlined_call_operand.vmem [shape: f32[1,64], index: 7, kind: input, shape index: {}]   ;;  %s657_s8 = inlined_call_operand.vmem [shape: bf16[64,32], index: 8, kind: input, shape index: {}]   ;;  %s658_s9 = inlined_call_operand.vmem [shape: f32[1,32], index: 9, kind: input, shape index: {}]   ;;  %s659_s10 = inlined_call_operand.vmem [shape: f32[1,32], index: 10, kind: input, shape index: {}]   ;;  %s660_s11 = inlined_call_operand.vmem [shape: f32[1,32], index: 11, kind: input, shape index: {}]   ;;  %s661_s12 = inlined_call_operand.hbm [shape: f32[16,32], index: 12, kind: output, shape index: {}]  }
   0x1   :  { %v449_v0 = vld [vmem:[%s651_s2] sm:$0xff]   ;;  %416 = vmatprep.subr.bf16.mxu1 %v490_v1  ;;  %432 = vmatprep.subr.bf16.mxu0 %v490_v1  ;;  %v450_v2 = vld [vmem:[%s651_s2 + $0x8] sm:$0xff]  }
   0x2   :  { %417 = vmatpush3.bf16.msra.mxu1 %v449_v0  ;;  %420 = vmatprep.mubr.msk.bf16.mxu1 %vm491_vm0, %v490_v1  ;;  %v451_v3 = vld [vmem:[%s649_s0] sm:$0xff]  }
   0x3   :  { %418 = vmatprep.subr.bf16.mxu1 %v490_v1  ;;  %440 = vmatprep.mubr.msk.bf16.mxu0 %vm491_vm0, %v490_v1 }
   0x6   :  { %419 = vmatpush3.bf16.msra.mxu1 %v450_v2 }
   0x7   :  { %424 = vmatprep.subr.bf16.mxu1 %v490_v1 }
   0x8   :  { %17 = vsyncpa [#allocation3], 0  ;;  %v386_v4 = vld [vmem:[%s652_s3] ss:$0 sm:$0xff]  ;;  %v44_v10 = vld [vmem:[%s650_s1 + $0x8] sm:$0xff]  ;;  %vm277_vm2 = vcmask 523264  }
   0x9   :  { %421 = vmatmul.mubr.msk.bf16.vlgmr.msra.gmra.mrb[0].mxu1 %vm75_vm1, %v451_v3  ;;  %v43_v6 = vld [vmem:[%s650_s1] sm:$0xff]  ;;  %v453_v28 = vld [vmem:[%s655_s6 + $0x8] sm:$0xff]   ;;  %v456_v48 = vld [vmem:[%s657_s8 + $0x10] sm:$0xff]   ;;  %s492_s28 = smov [#allocation2]  }
   0xa   :  { %428 = vmatprep.mubr.msk.bf16.mxu1 %vm491_vm0, %v490_v1  ;;  %v452_v27 = vld [vmem:[%s655_s6] sm:$0xff]   ;;  %v455_v30 = vld [vmem:[%s657_s8 + $0x8] sm:$0xff]   ;;  %v457_v49 = vld [vmem:[%s657_s8 + $0x18] sm:$0xff]   ;;  %s375_s29 = sshll.u32 %s492_s28, 4  ;;  %s376_s29 = int_to_ptr.vmem [resolvable:$true] %s375_s29 }
   0xb   :  { %425 = vmatpush3.bf16.msra.mxu1 %v452_v27  ;;  %v454_v29 = vld [vmem:[%s657_s8] sm:$0xff]   ;;  %s466_s0 = scalar_lea.vmem %s376_s29, 256  ;;  %p471_p1 = scmp.lt.s32.totalorder %s376_s29, %s376_s29 }
   0xc   :  { %426 = vmatprep.subr.bf16.mxu1 %v490_v1  ;;  %433 = vmatpush3.bf16.msra.mxu0 %v454_v29  ;;  %v391_v39 = vld [vmem:[%s653_s4] ss:$0 sm:$0xff]  ;;  %p467_p0 = scmp.ne.s32.totalorder %s376_s29, %s466_s0  ;;  %p472_p2 = scmp.lt.s32.totalorder %s466_s0, %s466_s0 }
   0xd   :  { %434 = vmatprep.subr.bf16.mxu0 %v490_v1  ;;  %v392_v43 = vld [vmem:[%s654_s5] ss:$0 sm:$0xff] }
   0xe   :  { %v393_v50 = vld [vmem:[%s656_s7] ss:$0 sm:$0xff]  ;;  %p473_p3 = por %p472_p2, %p471_p1 }
   0xf   :  { %427 = vmatpush3.bf16.msra.mxu1 %v453_v28  ;;  %v397_v60 = vld [vmem:[%s658_s9] ss:$0 sm:$0xff] }
  0x10   :  { %435 = vmatpush3.bf16.msra.mxu0 %v455_v30  ;;  %v404_v27 = vld [vmem:[%s660_s11] ss:$0 sm:$0xff]  ;;  %p474_p4 = pnand %p473_p3, %p467_p0 }
  0x11   :  { %436 = vmatprep.subr.bf16.mxu0 %v490_v1 }
  0x14   :  { %437 = vmatpush3.bf16.msra.mxu0 %v456_v48 }
  0x15   :  { %438 = vmatprep.subr.bf16.mxu0 %v490_v1 }
  0x18   :  { %439 = vmatpush3.bf16.msra.mxu0 %v457_v49 }
  0xdc   :  { %v113_v5 = vpop.f32.mrb[0].mxu1 }
  0xdd   :  { %v114_v7 = vadd.f32 %v386_v4, %v113_v5  ;;  %v422_v8 = vpop.f32.mrb[1].mxu1 }
  0xde   :  { %v116_v9 = vpop.f32.mrb[2].mxu1 }
  0xdf   :  { %v117_v11 = vadd.f32 %v386_v4, %v116_v9  ;;  %v423_v12 = vpop.f32.mrb[3].mxu1  ;;  %v120_v13 = vadd.f32 %v114_v7, %v43_v6 }
  0xe1   :  { %v122_v14 = vsel %vm75_vm1, %v120_v13, 0.0  ;;  %v121_v15 = vadd.f32 %v117_v11, %v44_v10 }
  0xe2   :  { %123 = vadd.xlane.f32.xlu0 %v122_v14 }
  0xe3   :  { %v125_v16 = vsel %vm75_vm1, %v121_v15, 0.0 }
  0xe6   :  { %126 = vadd.xlane.f32.xlu0 %v125_v16 }
 0x16f   :  { %v124_v17 = vpop.xlane.xlu0 %123 }
 0x170   :  { %v129_v18 = vmul.f32 0.03125, %v124_v17 }
 0x172   :  { %v131_v19 = vsub.f32 %v120_v13, %v129_v18 }
 0x173   :  { %v127_v20 = vpop.xlane.xlu0 %126 }
 0x174   :  { %v130_v21 = vmul.f32 0.03125, %v127_v20  ;;  %v133_v22 = vmul.f32 %v131_v19, %v131_v19 }
 0x176   :  { %v132_v23 = vsub.f32 %v121_v15, %v130_v21  ;;  %v135_v24 = vsel %vm75_vm1, %v133_v22, 0.0 }
 0x177   :  { %136 = vadd.xlane.f32.xlu1 %v135_v24  ;;  %v403_v24 = vld [vmem:[%s659_s10] ss:$0 sm:$0xff] }
 0x178   :  { %v134_v25 = vmul.f32 %v132_v23, %v132_v23 }
 0x17a   :  { %v138_v26 = vsel %vm75_vm1, %v134_v25, 0.0 }
 0x17b   :  { %139 = vadd.xlane.f32.xlu1 %v138_v26 }
 0x204   :  { %v137_v31 = vpop.xlane.xlu1 %136 }
 0x205   :  { %v141_v32 = vmul.f32 0.03125, %v137_v31 }
 0x207   :  { %v143_v33 = vadd.f32 1e-05, %v141_v32 }
 0x208   :  { %v140_v34 = vpop.xlane.xlu1 %139 }
 0x209   :  { %458 = vrsqrt.f32 %v143_v33  ;;  %v142_v35 = vmul.f32 0.03125, %v140_v34 }
 0x20b   :  { %v144_v36 = vadd.f32 1e-05, %v142_v35 }
 0x20d   :  { %460 = vrsqrt.f32 %v144_v36 }
 0x213   :  { %v459_v37 = vpop.eup %458 }
 0x214   :  { %v147_v38 = vmul.f32 %v459_v37, %v131_v19 }
 0x216   :  { %v156_v41 = vmul.f32 %v391_v39, %v147_v38 }
 0x217   :  { %v461_v40 = vpop.eup %460 }
 0x218   :  { %v148_v42 = vmul.f32 %v461_v40, %v132_v23  ;;  %v165_v45 = vadd.f32 %v392_v43, %v156_v41 }
 0x21a   :  { %v157_v44 = vmul.f32 %v391_v39, %v148_v42 }
 0x21c   :  { %v166_v46 = vadd.f32 %v392_v43, %v157_v44 }
 0x21e   :  { %v167_v47 = vpack.c.bf16 %v166_v46, %v165_v45 }
 0x220   :  { %429 = vmatmul.mubr.msk.bf16.vlgmr.msra.gmra.mrb[4].mxu1 %vm75_vm1, %v167_v47 }
 0x2f3   :  { %v228_v51 = vpop.f32.mrb[4].mxu1 }
 0x2f4   :  { %v229_v52 = vadd.f32 %v393_v50, %v228_v51  ;;  %v430_v53 = vpop.f32.mrb[5].mxu1 }
 0x2f5   :  { %v231_v54 = vpop.f32.mrb[6].mxu1 }
 0x2f6   :  { %v232_v55 = vadd.f32 %v393_v50, %v231_v54  ;;  %v431_v56 = vpop.f32.mrb[7].mxu1  ;;  %v235_v57 = vmax.f32 %v229_v52, 0.0 }
 0x2f8   :  { %v236_v58 = vmax.f32 %v232_v55, 0.0 }
 0x2fa   :  { %v237_v59 = vpack.c.bf16 %v236_v58, %v235_v57 }
 0x2fc   :  { %441 = vmatmul.mubr.msk.bf16.vlgmr.msra.gmra.mrb[0].mxu0 %vm277_vm2, %v237_v59 }
 0x3cf   :  { %v315_v61 = vpop.f32.mrb[0].mxu0 }
 0x3d0   :  { %v316_v62 = vadd.f32 %v397_v60, %v315_v61  ;;  %v442_v63 = vpop.f32.mrb[1].mxu0 }
 0x3d1   :  { %v318_v0 = vpop.f32.mrb[2].mxu0 }
 0x3d2   :  { %v319_v1 = vadd.f32 %v397_v60, %v318_v0  ;;  %v443_v2 = vpop.f32.mrb[3].mxu0  ;;  %v322_v3 = vadd.f32 %v316_v62, %v165_v45 }
 0x3d4   :  { %v324_v4 = vsel %vm75_vm1, %v322_v3, 0.0  ;;  %v323_v5 = vadd.f32 %v319_v1, %v166_v46 }
 0x3d5   :  { %325 = vadd.xlane.f32.xlu0 %v324_v4 }
 0x3d6   :  { %v327_v6 = vsel %vm75_vm1, %v323_v5, 0.0 }
 0x3d7   :  { %328 = vadd.xlane.f32.xlu1 %v327_v6 }
 0x462   :  { %v326_v7 = vpop.xlane.xlu0 %325 }
 0x463   :  { %v330_v8 = vmul.f32 0.03125, %v326_v7 }
 0x464   :  { %v329_v9 = vpop.xlane.xlu1 %328 }
 0x465   :  { %v332_v10 = vsub.f32 %v322_v3, %v330_v8  ;;  %v331_v11 = vmul.f32 0.03125, %v329_v9 }
 0x467   :  { %v333_v12 = vsub.f32 %v323_v5, %v331_v11  ;;  %v334_v13 = vmul.f32 %v332_v10, %v332_v10 }
 0x469   :  { %v336_v14 = vsel %vm75_vm1, %v334_v13, 0.0  ;;  %v335_v15 = vmul.f32 %v333_v12, %v333_v12 }
 0x46a   :  { %337 = vadd.xlane.f32.xlu0 %v336_v14 }
 0x46b   :  { %v339_v16 = vsel %vm75_vm1, %v335_v15, 0.0 }
 0x46c   :  { %340 = vadd.xlane.f32.xlu1 %v339_v16 }
 0x4f7   :  { %v338_v17 = vpop.xlane.xlu0 %337 }
 0x4f8   :  { %v342_v18 = vmul.f32 0.03125, %v338_v17 }
 0x4f9   :  { %v341_v19 = vpop.xlane.xlu1 %340 }
 0x4fa   :  { %v344_v20 = vadd.f32 1e-06, %v342_v18  ;;  %v343_v21 = vmul.f32 0.03125, %v341_v19 }
 0x4fc   :  { %462 = vrsqrt.f32 %v344_v20  ;;  %v345_v22 = vadd.f32 1e-06, %v343_v21 }
 0x4fe   :  { %464 = vrsqrt.f32 %v345_v22 }
 0x506   :  { %v463_v23 = vpop.eup %462 }
 0x507   :  { %v348_v25 = vmul.f32 %v463_v23, %v332_v10 }
 0x508   :  { %v465_v26 = vpop.eup %464 }
 0x509   :  { %v349_v28 = vmul.f32 %v465_v26, %v333_v12  ;;  %v357_v29 = vmul.f32 %v403_v24, %v348_v25 }
 0x50b   :  { %v358_v30 = vmul.f32 %v403_v24, %v349_v28  ;;  %v366_v31 = vadd.f32 %v404_v27, %v357_v29 }
 0x50d   :  { %v367_v32 = vadd.f32 %v404_v27, %v358_v30  ;;  %368 = vst.msk [vmem:[#allocation2] sm:$0xff] %vm75_vm1, %v366_v31 }
 0x50f   :  { %369 = vst.msk [vmem:[#allocation2 + $0x8] sm:$0xff] %vm75_vm1, %v367_v32 }
 0x510   :  { %477 = shalt.err (!%p474_p4)
}
 0x511   :  { %s478_s30 = scalar_lea.hbm %s661_s12, 256 }
 0x512   :  { %p479_p5 = scmp.ne.s32.totalorder %s661_s12, %s478_s30  ;;  %p482_p6 = scmp.lt.u32.totalorder %s478_s30, %s661_s12 }
 0x514   :  { %p484_p7 = pnand %p482_p6, %p479_p5 }
 0x516   :  { %487 = shalt.err (!%p484_p7)
}
 0x517   :  { %s493_s15 = smov 128   ;;  %s494_s16 = smov 8  }
 0x518   :  { %381 = dma.vmem_to_hbm [thread:$0]  %s376_s29, 256, %s661_s12, [#allocation3], %s493_s15, %s493_s15, %s494_s16  }
 0x519   :  { %488 = dma.done.wait [#allocation3], 256  }
 0x51a   :  { %489 = vsyncadd [#allocation3], 4294967040 }
 0x51b   :  { %385 = vsyncpa [#allocation3], 1 }

// kernel: reformer_encoder.11
= control target key start
LH: loop header
LB: loop body
LE: loop exit
PB: predicated region body
PF: predicated region fallthrough
CT: control target
= control target key end

     0   :  { %v450_v0 = vmov 0.0   ;;  %vm451_vm0 = vmmov 0   ;;  %vm74_vm1 = vcmask 261120   ;;  %vm276_vm2 = vcmask 523264   ;;  %s600_s2 = inlined_call_operand.vmem [shape: bf16[32,32], index: 2, kind: input, shape index: {}]   ;;  %s601_s0 = inlined_call_operand.vmem [shape: bf16[16,32], index: 0, kind: input, shape index: {}]   ;;  %s602_s3 = inlined_call_operand.vmem [shape: f32[1,32], index: 3, kind: input, shape index: {}]   ;;  %s603_s1 = inlined_call_operand.vmem [shape: f32[16,32], index: 1, kind: input, shape index: {}]   ;;  %s604_s6 = inlined_call_operand.vmem [shape: bf16[32,64], index: 6, kind: input, shape index: {}]   ;;  %s605_s8 = inlined_call_operand.vmem [shape: bf16[64,32], index: 8, kind: input, shape index: {}]   ;;  %s606_s4 = inlined_call_operand.vmem [shape: f32[1,32], index: 4, kind: input, shape index: {}]   ;;  %s607_s5 = inlined_call_operand.vmem [shape: f32[1,32], index: 5, kind: input, shape index: {}]   ;;  %s608_s7 = inlined_call_operand.vmem [shape: f32[1,64], index: 7, kind: input, shape index: {}]   ;;  %s609_s9 = inlined_call_operand.vmem [shape: f32[1,32], index: 9, kind: input, shape index: {}]   ;;  %s610_s10 = inlined_call_operand.vmem [shape: f32[1,32], index: 10, kind: input, shape index: {}]   ;;  %s611_s11 = inlined_call_operand.vmem [shape: f32[1,32], index: 11, kind: input, shape index: {}]   ;;  %s612_s12 = inlined_call_operand.vmem [shape: f32[16,32], index: 12, kind: output, shape index: {}]  }
   0x1   :  { %403 = vmatprep.subr.bf16.mxu1 %v450_v0  ;;  %v433_v1 = vld [vmem:[%s600_s2] sm:$0xff]   ;;  %407 = vmatprep.mubr.msk.bf16.mxu1 %vm451_vm0, %v450_v0  ;;  %v434_v2 = vld [vmem:[%s600_s2 + $0x8] sm:$0xff]   ;;  %v440_v48 = vld [vmem:[%s605_s8 + $0x10] sm:$0xff]  }
   0x2   :  { %419 = vmatprep.subr.bf16.mxu0 %v450_v0  ;;  %427 = vmatprep.mubr.msk.bf16.mxu0 %vm451_vm0, %v450_v0  ;;  %v435_v3 = vld [vmem:[%s601_s0] sm:$0xff]   ;;  %v43_v10 = vld [vmem:[%s603_s1 + $0x8] sm:$0xff]  ;;  %v441_v49 = vld [vmem:[%s605_s8 + $0x18] sm:$0xff]  }
   0x3   :  { %404 = vmatpush3.bf16.msra.mxu1 %v433_v1  ;;  %v373_v4 = vld [vmem:[%s602_s3] ss:$0 sm:$0xff]  ;;  %v437_v28 = vld [vmem:[%s604_s6 + $0x8] sm:$0xff]  }
   0x4   :  { %405 = vmatprep.subr.bf16.mxu1 %v450_v0  ;;  %v42_v6 = vld [vmem:[%s603_s1] sm:$0xff]  ;;  %v439_v30 = vld [vmem:[%s605_s8 + $0x8] sm:$0xff]  }
   0x5   :  { %v436_v27 = vld [vmem:[%s604_s6] sm:$0xff]  }
   0x6   :  { %v438_v29 = vld [vmem:[%s605_s8] sm:$0xff]  }
   0x7   :  { %406 = vmatpush3.bf16.msra.mxu1 %v434_v2  ;;  %420 = vmatpush3.bf16.msra.mxu0 %v438_v29  ;;  %v378_v39 = vld [vmem:[%s606_s4] ss:$0 sm:$0xff] }
   0x8   :  { %411 = vmatprep.subr.bf16.mxu1 %v450_v0  ;;  %421 = vmatprep.subr.bf16.mxu0 %v450_v0  ;;  %v379_v43 = vld [vmem:[%s607_s5] ss:$0 sm:$0xff] }
   0x9   :  { %v380_v50 = vld [vmem:[%s608_s7] ss:$0 sm:$0xff] }
   0xa   :  { %408 = vmatmul.mubr.msk.bf16.vlgmr.msra.gmra.mrb[0].mxu1 %vm74_vm1, %v435_v3  ;;  %v384_v60 = vld [vmem:[%s609_s9] ss:$0 sm:$0xff] }
   0xb   :  { %415 = vmatprep.mubr.msk.bf16.mxu1 %vm451_vm0, %v450_v0  ;;  %412 = vmatpush3.bf16.msra.mxu1 %v436_v27  ;;  %v391_v27 = vld [vmem:[%s611_s11] ss:$0 sm:$0xff] }
   0xc   :  { %413 = vmatprep.subr.bf16.mxu1 %v450_v0  ;;  %422 = vmatpush3.bf16.msra.mxu0 %v439_v30 }
   0xd   :  { %423 = vmatprep.subr.bf16.mxu0 %v450_v0 }
   0xf   :  { %414 = vmatpush3.bf16.msra.mxu1 %v437_v28 }
  0x10   :  { %424 = vmatpush3.bf16.msra.mxu0 %v440_v48 }
  0x11   :  { %425 = vmatprep.subr.bf16.mxu0 %v450_v0 }
  0x14   :  { %426 = vmatpush3.bf16.msra.mxu0 %v441_v49 }
  0xdd   :  { %v112_v5 = vpop.f32.mrb[0].mxu1 }
  0xde   :  { %v113_v7 = vadd.f32 %v373_v4, %v112_v5  ;;  %v409_v8 = vpop.f32.mrb[1].mxu1 }
  0xdf   :  { %v115_v9 = vpop.f32.mrb[2].mxu1 }
  0xe0   :  { %v116_v11 = vadd.f32 %v373_v4, %v115_v9  ;;  %v410_v12 = vpop.f32.mrb[3].mxu1  ;;  %v119_v13 = vadd.f32 %v113_v7, %v42_v6 }
  0xe2   :  { %v121_v14 = vsel %vm74_vm1, %v119_v13, 0.0  ;;  %v120_v15 = vadd.f32 %v116_v11, %v43_v10 }
  0xe3   :  { %122 = vadd.xlane.f32.xlu0 %v121_v14 }
  0xe4   :  { %v124_v16 = vsel %vm74_vm1, %v120_v15, 0.0 }
  0xe7   :  { %125 = vadd.xlane.f32.xlu0 %v124_v16 }
 0x170   :  { %v123_v17 = vpop.xlane.xlu0 %122 }
 0x171   :  { %v128_v18 = vmul.f32 0.03125, %v123_v17 }
 0x173   :  { %v130_v19 = vsub.f32 %v119_v13, %v128_v18 }
 0x174   :  { %v126_v20 = vpop.xlane.xlu0 %125 }
 0x175   :  { %v129_v21 = vmul.f32 0.03125, %v126_v20  ;;  %v132_v22 = vmul.f32 %v130_v19, %v130_v19 }
 0x177   :  { %v131_v23 = vsub.f32 %v120_v15, %v129_v21  ;;  %v134_v24 = vsel %vm74_vm1, %v132_v22, 0.0 }
 0x178   :  { %135 = vadd.xlane.f32.xlu1 %v134_v24  ;;  %v390_v24 = vld [vmem:[%s610_s10] ss:$0 sm:$0xff] }
 0x179   :  { %v133_v25 = vmul.f32 %v131_v23, %v131_v23 }
 0x17b   :  { %v137_v26 = vsel %vm74_vm1, %v133_v25, 0.0 }
 0x17c   :  { %138 = vadd.xlane.f32.xlu1 %v137_v26 }
 0x205   :  { %v136_v31 = vpop.xlane.xlu1 %135 }
 0x206   :  { %v140_v32 = vmul.f32 0.03125, %v136_v31 }
 0x208   :  { %v142_v33 = vadd.f32 1e-05, %v140_v32 }
 0x209   :  { %v139_v34 = vpop.xlane.xlu1 %138 }
 0x20a   :  { %442 = vrsqrt.f32 %v142_v33  ;;  %v141_v35 = vmul.f32 0.03125, %v139_v34 }
 0x20c   :  { %v143_v36 = vadd.f32 1e-05, %v141_v35 }
 0x20e   :  { %444 = vrsqrt.f32 %v143_v36 }
 0x214   :  { %v443_v37 = vpop.eup %442 }
 0x215   :  { %v146_v38 = vmul.f32 %v443_v37, %v130_v19 }
 0x217   :  { %v155_v41 = vmul.f32 %v378_v39, %v146_v38 }
 0x218   :  { %v445_v40 = vpop.eup %444 }
 0x219   :  { %v147_v42 = vmul.f32 %v445_v40, %v131_v23  ;;  %v164_v45 = vadd.f32 %v379_v43, %v155_v41 }
 0x21b   :  { %v156_v44 = vmul.f32 %v378_v39, %v147_v42 }
 0x21d   :  { %v165_v46 = vadd.f32 %v379_v43, %v156_v44 }
 0x21f   :  { %v166_v47 = vpack.c.bf16 %v165_v46, %v164_v45 }
 0x221   :  { %416 = vmatmul.mubr.msk.bf16.vlgmr.msra.gmra.mrb[4].mxu1 %vm74_vm1, %v166_v47 }
 0x2f4   :  { %v227_v51 = vpop.f32.mrb[4].mxu1 }
 0x2f5   :  { %v228_v52 = vadd.f32 %v380_v50, %v227_v51  ;;  %v417_v53 = vpop.f32.mrb[5].mxu1 }
 0x2f6   :  { %v230_v54 = vpop.f32.mrb[6].mxu1 }
 0x2f7   :  { %v231_v55 = vadd.f32 %v380_v50, %v230_v54  ;;  %v418_v56 = vpop.f32.mrb[7].mxu1  ;;  %v234_v57 = vmax.f32 %v228_v52, 0.0 }
 0x2f9   :  { %v235_v58 = vmax.f32 %v231_v55, 0.0 }
 0x2fb   :  { %v236_v59 = vpack.c.bf16 %v235_v58, %v234_v57 }
 0x2fd   :  { %428 = vmatmul.mubr.msk.bf16.vlgmr.msra.gmra.mrb[0].mxu0 %vm276_vm2, %v236_v59 }
 0x3d0   :  { %v314_v61 = vpop.f32.mrb[0].mxu0 }
 0x3d1   :  { %v315_v62 = vadd.f32 %v384_v60, %v314_v61  ;;  %v429_v63 = vpop.f32.mrb[1].mxu0 }
 0x3d2   :  { %v317_v0 = vpop.f32.mrb[2].mxu0 }
 0x3d3   :  { %v318_v1 = vadd.f32 %v384_v60, %v317_v0  ;;  %v430_v2 = vpop.f32.mrb[3].mxu0  ;;  %v321_v3 = vadd.f32 %v315_v62, %v164_v45 }
 0x3d5   :  { %v323_v4 = vsel %vm74_vm1, %v321_v3, 0.0  ;;  %v322_v5 = vadd.f32 %v318_v1, %v165_v46 }
 0x3d6   :  { %324 = vadd.xlane.f32.xlu0 %v323_v4 }
 0x3d7   :  { %v326_v6 = vsel %vm74_vm1, %v322_v5, 0.0 }
 0x3d8   :  { %327 = vadd.xlane.f32.xlu1 %v326_v6 }
 0x463   :  { %v325_v7 = vpop.xlane.xlu0 %324 }
 0x464   :  { %v329_v8 = vmul.f32 0.03125, %v325_v7 }
 0x465   :  { %v328_v9 = vpop.xlane.xlu1 %327 }
 0x466   :  { %v331_v10 = vsub.f32 %v321_v3, %v329_v8  ;;  %v330_v11 = vmul.f32 0.03125, %v328_v9 }
 0x468   :  { %v332_v12 = vsub.f32 %v322_v5, %v330_v11  ;;  %v333_v13 = vmul.f32 %v331_v10, %v331_v10 }
 0x46a   :  { %v335_v14 = vsel %vm74_vm1, %v333_v13, 0.0  ;;  %v334_v15 = vmul.f32 %v332_v12, %v332_v12 }
 0x46b   :  { %336 = vadd.xlane.f32.xlu0 %v335_v14 }
 0x46c   :  { %v338_v16 = vsel %vm74_vm1, %v334_v15, 0.0 }
 0x46d   :  { %339 = vadd.xlane.f32.xlu1 %v338_v16 }
 0x4f8   :  { %v337_v17 = vpop.xlane.xlu0 %336 }
 0x4f9   :  { %v341_v18 = vmul.f32 0.03125, %v337_v17 }
 0x4fa   :  { %v340_v19 = vpop.xlane.xlu1 %339 }
 0x4fb   :  { %v343_v20 = vadd.f32 1e-06, %v341_v18  ;;  %v342_v21 = vmul.f32 0.03125, %v340_v19 }
 0x4fd   :  { %446 = vrsqrt.f32 %v343_v20  ;;  %v344_v22 = vadd.f32 1e-06, %v342_v21 }
 0x4ff   :  { %448 = vrsqrt.f32 %v344_v22 }
 0x507   :  { %v447_v23 = vpop.eup %446 }
 0x508   :  { %v347_v25 = vmul.f32 %v447_v23, %v331_v10 }
 0x509   :  { %v449_v26 = vpop.eup %448 }
 0x50a   :  { %v356_v28 = vmul.f32 %v390_v24, %v347_v25  ;;  %v348_v29 = vmul.f32 %v449_v26, %v332_v12 }
 0x50c   :  { %v365_v30 = vadd.f32 %v391_v27, %v356_v28  ;;  %v357_v31 = vmul.f32 %v390_v24, %v348_v29 }
 0x50e   :  { %367 = vst.msk [vmem:[%s612_s12] sm:$0xff] %vm74_vm1, %v365_v30  ;;  %v366_v32 = vadd.f32 %v391_v27, %v357_v31 }
 0x510   :  { %368 = vst.msk [vmem:[%s612_s12 + $0x8] sm:$0xff] %vm74_vm1, %v366_v32 }

</bundles_post_ra>
